<compile_context>
chip_gen: v7x
topology: tpu7x:2x2x1
jax: 0.10.0
libtpu: 0.0.40
codegen_flags: <defaults>
</compile_context>

<pallas_src>
import jax
import jax.numpy as jnp
import numpy as np
from jax.experimental import pallas as pl
from jax.experimental.pallas import tpu as pltpu

INPUT_SIZE = 1
D_MODEL = 64
NHEAD = 2
HEAD_DIM = D_MODEL // NHEAD
DIM_FF = 256
NUM_LAYERS = 2
LN_EPS = 1e-5

FVEC_WIDTH = 256        # = max(3*D_MODEL, DIM_FF)
ROWS_PER_LAYER = 8      # bqkv, bo, ln1w, ln1b, b1, b2, ln2w, ln2b


def _fvec_layout(N):
    """Static row offsets inside the packed f32 parameter slab."""
    off = {
        "proj_w": 0,          # lanes [0:D]
        "fc_w": 1,            # lanes [0:D]
        "fc_b": 2,            # lane  [0]
        "posb": 3,            # N rows, lanes [0:D] (pos_enc tiled over batch + proj bias)
        "layers": 3 + N,      # NUM_LAYERS * ROWS_PER_LAYER rows
    }
    off["rows"] = off["layers"] + NUM_LAYERS * ROWS_PER_LAYER
    return off


def _layer_norm(x, w, b):
    mu = jnp.mean(x, axis=-1, keepdims=True)
    xc = x - mu
    var = jnp.mean(xc * xc, axis=-1, keepdims=True)
    return xc * jax.lax.rsqrt(var + LN_EPS) * w + b


def _make_kernel(B, S):
    N = B * S
    HN = NHEAD * N
    D, K, FF = D_MODEL, HEAD_DIM, DIM_FF
    off = _fvec_layout(N)
    scale = float(1.0 / np.sqrt(K))
    bf16 = jnp.bfloat16

    def kernel(x_ref, fvec_ref, wqkv_ref, wo_ref, w1_ref, w2_ref, mask_ref, out_ref):
        # ---- input projection (contraction dim == 1 -> broadcast mul) + pos enc ----
        proj_w = fvec_ref[off["proj_w"]:off["proj_w"] + 1, 0:D]          # (1, D)
        posb = fvec_ref[off["posb"]:off["posb"] + N, 0:D]                # (N, D)
        h = x_ref[...] * proj_w + posb                                   # (N, D) f32

        mask = mask_ref[...]                                             # (HN, HN): 0 / -1e9

        for l in range(NUM_LAYERS):
            base = off["layers"] + l * ROWS_PER_LAYER
            bqkv = fvec_ref[base + 0:base + 1, 0:3 * D]                  # (1, 3D), K-bias zeroed
            bo   = fvec_ref[base + 1:base + 2, 0:D]
            ln1w = fvec_ref[base + 2:base + 3, 0:D]
            ln1b = fvec_ref[base + 3:base + 4, 0:D]
            b1   = fvec_ref[base + 4:base + 5, 0:FF]
            b2   = fvec_ref[base + 5:base + 6, 0:D]
            ln2w = fvec_ref[base + 6:base + 7, 0:D]
            ln2b = fvec_ref[base + 7:base + 8, 0:D]

            # -------- self-attention (post-norm), both heads in one pass --------
            h_b = h.astype(bf16)
            qkv = jnp.dot(h_b, wqkv_ref[l],
                          preferred_element_type=jnp.float32) + bqkv     # (N, 3D): one MXU dot
            # stack heads on the sublane (row) axis -> one softmax for all heads
            q = jnp.concatenate(
                [qkv[:, hh * K:(hh + 1) * K] for hh in range(NHEAD)], axis=0)           # (HN, K)
            k = jnp.concatenate(
                [qkv[:, D + hh * K:D + (hh + 1) * K] for hh in range(NHEAD)], axis=0)   # (HN, K)
            v = jnp.concatenate(
                [qkv[:, 2 * D + hh * K:2 * D + (hh + 1) * K] for hh in range(NHEAD)], axis=0)
            s = jax.lax.dot_general(q.astype(bf16), k.astype(bf16),
                                    (((1,), (1,)), ((), ())),
                                    preferred_element_type=jnp.float32)  # (HN, HN)
            # block-diag over (head, batch): no cross-head / cross-batch attention
            s = s * scale + mask
            m = jnp.max(s, axis=-1, keepdims=True)
            e = jnp.exp(s - m)
            p = e * pl.reciprocal(jnp.sum(e, axis=-1, keepdims=True), approx=True)
            o = jnp.dot(p.astype(bf16), v.astype(bf16),
                        preferred_element_type=jnp.float32)              # (HN, K)
            # output projection: per-head accumulating dots (no lane concat of heads)
            wo_l = wo_ref[l]                                             # (D, D) bf16
            attn = bo
            for hh in range(NHEAD):
                attn = attn + jnp.dot(o[hh * N:(hh + 1) * N, :].astype(bf16),
                                      wo_l[hh * K:(hh + 1) * K, :],
                                      preferred_element_type=jnp.float32)
            h = _layer_norm(h + attn, ln1w, ln1b)

            # -------- feed-forward (ReLU) --------
            h_b = h.astype(bf16)
            f = jnp.dot(h_b, w1_ref[l],
                        preferred_element_type=jnp.float32) + b1         # (N, FF)
            f = jnp.maximum(f, 0.0)
            f = jnp.dot(f.astype(bf16), w2_ref[l],
                        preferred_element_type=jnp.float32) + b2         # (N, D)
            h = _layer_norm(h + f, ln2w, ln2b)

        # ---- mean pool per batch element: f32 VPU segment means (no bf16 cast / MXU) ----
        pooled = jnp.concatenate(
            [jnp.mean(h[b * S:(b + 1) * S, :], axis=0, keepdims=True) for b in range(B)],
            axis=0)                                                      # (B, D)
        fc_w = fvec_ref[off["fc_w"]:off["fc_w"] + 1, 0:D]                # (1, D)
        fc_b = fvec_ref[off["fc_b"]:off["fc_b"] + 1, 0:1]                # (1, 1)
        # NOTE: (B, 1) output is lane-sparse; negligible at B=2 (write pooled instead if B grows).
        out_ref[...] = jnp.sum(pooled * fc_w, axis=-1, keepdims=True) + fc_b

    return kernel


def transformer_forward(x, params):
    B, S, _ = x.shape
    N = B * S
    HN = NHEAD * N
    L, D = NUM_LAYERS, D_MODEL
    bf16 = jnp.bfloat16

    x_flat = x.reshape(N, INPUT_SIZE).astype(jnp.float32)

    def pad_row(v):
        return jnp.pad(v, ((0, 0), (0, FVEC_WIDTH - v.shape[1])))

    # K bias cancels exactly in softmax -> zero it out of the packed QKV bias.
    bqkv = params["in_b"].at[:, :, D:2 * D].set(0.0)                      # (L, 1, 3D)
    posb = jnp.tile(params["pos_enc"][:S, :], (B, 1)) + params["proj_b"]  # (N, D)

    rows = [pad_row(params["proj_w"]),
            pad_row(params["fc_w"]),
            pad_row(params["fc_b"]),
            pad_row(posb)]
    for l in range(L):
        rows += [pad_row(bqkv[l]),
                 pad_row(params["out_b"][l]),
                 pad_row(params["ln1_w"][l]), pad_row(params["ln1_b"][l]),
                 pad_row(params["lin1_b"][l]),
                 pad_row(params["lin2_b"][l]),
                 pad_row(params["ln2_w"][l]), pad_row(params["ln2_b"][l])]
    fvec = jnp.concatenate(rows, axis=0)                                  # (3+N+8L, 256) f32

    wqkv = params["in_w"].astype(bf16)     # (L, D, 3D)  fused QKV weight
    wo = params["out_w"].astype(bf16)      # (L, D, D)
    w1 = params["lin1_w"].astype(bf16)     # (L, D, FF)
    w2 = params["lin2_w"].astype(bf16)     # (L, FF, D)

    # block-diagonal additive mask over the (head, batch)-stacked score rows/cols
    idx = jnp.arange(HN, dtype=jnp.int32)
    head_id, batch_id = idx // N, (idx % N) // S
    same = (head_id[:, None] == head_id[None, :]) & (batch_id[:, None] == batch_id[None, :])
    mask = jnp.where(same, 0.0, -1e9).astype(jnp.float32)                 # (HN, HN)

    args = (x_flat, fvec, wqkv, wo, w1, w2, mask)
    vmem = pl.BlockSpec(memory_space=pltpu.MemorySpace.VMEM)
    return pl.pallas_call(
        _make_kernel(B, S),
        out_shape=jax.ShapeDtypeStruct((B, 1), jnp.float32),
        in_specs=[vmem] * len(args),
        out_specs=vmem,
    )(*args)


def init_params(key):
    keys = jax.random.split(key, 13)

    def uni(k, shape, fan_in):
        bound = 1.0 / np.sqrt(fan_in)
        return jax.random.uniform(k, shape, jnp.float32, -bound, bound)

    L, D, FF = NUM_LAYERS, D_MODEL, DIM_FF
    p = {}
    p["proj_w"] = uni(keys[0], (INPUT_SIZE, D), INPUT_SIZE)       # Linear(1, D).weight.T
    p["proj_b"] = uni(keys[1], (1, D), INPUT_SIZE)
    p["pos_enc"] = jax.random.normal(keys[2], (1000, D), jnp.float32)
    p["in_w"] = uni(keys[3], (L, D, 3 * D), D)                    # in_proj_weight.T per layer
    p["in_b"] = uni(keys[4], (L, 1, 3 * D), D)
    p["out_w"] = uni(keys[5], (L, D, D), D)                       # out_proj.weight.T per layer
    p["out_b"] = uni(keys[6], (L, 1, D), D)
    p["ln1_w"] = jnp.ones((L, 1, D), jnp.float32)
    p["ln1_b"] = jnp.zeros((L, 1, D), jnp.float32)
    p["lin1_w"] = uni(keys[7], (L, D, FF), D)
    p["lin1_b"] = uni(keys[8], (L, 1, FF), D)
    p["lin2_w"] = uni(keys[9], (L, FF, D), FF)
    p["lin2_b"] = uni(keys[10], (L, 1, D), FF)
    p["ln2_w"] = jnp.ones((L, 1, D), jnp.float32)
    p["ln2_b"] = jnp.zeros((L, 1, D), jnp.float32)
    p["fc_w"] = uni(keys[11], (1, D), D)                          # fc.weight (1, D)
    p["fc_b"] = uni(keys[12], (1, 1), D)
    return p


def reference_forward(x, params):
    """Pure-JAX reference mirroring the PyTorch module (eval mode)."""
    B, S, _ = x.shape
    h = jnp.einsum("bsi,id->bsd", x, params["proj_w"]) + params["proj_b"][0]
    h = h + params["pos_enc"][:S][None]
    for l in range(NUM_LAYERS):
        qkv = jnp.einsum("bsd,de->bse", h, params["in_w"][l]) + params["in_b"][l, 0]
        q, k, v = jnp.split(qkv, 3, axis=-1)
        split = lambda t: t.reshape(B, S, NHEAD, HEAD_DIM).transpose(0, 2, 1, 3)
        qh, kh, vh = split(q), split(k), split(v)
        scores = jnp.einsum("bhqd,bhkd->bhqk", qh, kh) / np.sqrt(HEAD_DIM)
        p = jax.nn.softmax(scores, axis=-1)
        o = jnp.einsum("bhqk,bhkd->bhqd", p, vh).transpose(0, 2, 1, 3).reshape(B, S, D_MODEL)
        attn = jnp.einsum("bsd,de->bse", o, params["out_w"][l]) + params["out_b"][l, 0]
        h = _layer_norm(h + attn, params["ln1_w"][l], params["ln1_b"][l])
        f = jax.nn.relu(jnp.einsum("bsd,df->bsf", h, params["lin1_w"][l]) + params["lin1_b"][l, 0])
        f = jnp.einsum("bsf,fd->bsd", f, params["lin2_w"][l]) + params["lin2_b"][l, 0]
        h = _layer_norm(h + f, params["ln2_w"][l], params["ln2_b"][l])
    pooled = jnp.mean(h, axis=1)                                  # AdaptiveAvgPool1d(1)
    return jnp.sum(pooled * params["fc_w"], axis=-1, keepdims=True) + params["fc_b"]


if __name__ == "__main__":
    key = jax.random.PRNGKey(0)
    pkey, xkey = jax.random.split(key)
    params = init_params(pkey)

    B, S = 2, 8
    x = jax.random.normal(xkey, (B, S, INPUT_SIZE), jnp.float32)

    fwd = jax.jit(transformer_forward)
    out = jax.block_until_ready(fwd(x, params))
    ref = jax.block_until_ready(reference_forward(x, params))

    assert out.shape == (B, 1), out.shape
    if not np.allclose(np.asarray(out), np.asarray(ref), rtol=2e-2, atol=2e-2):
        raise SystemExit(f"MISMATCH:\nkernel={np.asarray(out)}\nref={np.asarray(ref)}")
    print("KERNEL_OK")
</pallas_src>

<mosaic_0001>
module attributes {stable_mosaic.version = 11 : i64} {
  func.func @kernel(%arg0: memref<16x1xf32, #tpu.memory_space<vmem>>, %arg1: memref<35x256xf32, #tpu.memory_space<vmem>>, %arg2: memref<2x64x192xbf16, #tpu.memory_space<vmem>>, %arg3: memref<2x64x64xbf16, #tpu.memory_space<vmem>>, %arg4: memref<2x64x256xbf16, #tpu.memory_space<vmem>>, %arg5: memref<2x256x64xbf16, #tpu.memory_space<vmem>>, %arg6: memref<32x32xf32, #tpu.memory_space<vmem>>, %arg7: memref<2x1xf32, #tpu.memory_space<vmem>>) attributes {dimension_semantics = [], scalar_prefetch = 0 : i64, scratch_operands = 0 : i64, tpu.core_type = #tpu.core_type<tc>} {
    %c0 = arith.constant 0 : index
    %c0_0 = arith.constant 0 : index
    %0 = vector.load %arg1[%c0, %c0_0] : memref<35x256xf32, #tpu.memory_space<vmem>>, vector<1x64xf32>
    %c3 = arith.constant 3 : index
    %c0_1 = arith.constant 0 : index
    %1 = vector.load %arg1[%c3, %c0_1] : memref<35x256xf32, #tpu.memory_space<vmem>>, vector<16x64xf32>
    %c0_2 = arith.constant 0 : index
    %c0_3 = arith.constant 0 : index
    %2 = vector.load %arg0[%c0_2, %c0_3] : memref<16x1xf32, #tpu.memory_space<vmem>>, vector<16x1xf32>
    %3 = vector.broadcast %2 : vector<16x1xf32> to vector<16x64xf32>
    %4 = vector.broadcast %0 : vector<1x64xf32> to vector<16x64xf32>
    %5 = arith.mulf %3, %4 : vector<16x64xf32>
    %6 = arith.addf %5, %1 : vector<16x64xf32>
    %c0_4 = arith.constant 0 : index
    %c0_5 = arith.constant 0 : index
    %7 = vector.load %arg6[%c0_4, %c0_5] : memref<32x32xf32, #tpu.memory_space<vmem>>, vector<32x32xf32>
    %c19 = arith.constant 19 : index
    %c0_6 = arith.constant 0 : index
    %8 = vector.load %arg1[%c19, %c0_6] : memref<35x256xf32, #tpu.memory_space<vmem>>, vector<1x192xf32>
    %c20 = arith.constant 20 : index
    %c0_7 = arith.constant 0 : index
    %9 = vector.load %arg1[%c20, %c0_7] : memref<35x256xf32, #tpu.memory_space<vmem>>, vector<1x64xf32>
    %c21 = arith.constant 21 : index
    %c0_8 = arith.constant 0 : index
    %10 = vector.load %arg1[%c21, %c0_8] : memref<35x256xf32, #tpu.memory_space<vmem>>, vector<1x64xf32>
    %c22 = arith.constant 22 : index
    %c0_9 = arith.constant 0 : index
    %11 = vector.load %arg1[%c22, %c0_9] : memref<35x256xf32, #tpu.memory_space<vmem>>, vector<1x64xf32>
    %c23 = arith.constant 23 : index
    %c0_10 = arith.constant 0 : index
    %12 = vector.load %arg1[%c23, %c0_10] : memref<35x256xf32, #tpu.memory_space<vmem>>, vector<1x256xf32>
    %c24 = arith.constant 24 : index
    %c0_11 = arith.constant 0 : index
    %13 = vector.load %arg1[%c24, %c0_11] : memref<35x256xf32, #tpu.memory_space<vmem>>, vector<1x64xf32>
    %c25 = arith.constant 25 : index
    %c0_12 = arith.constant 0 : index
    %14 = vector.load %arg1[%c25, %c0_12] : memref<35x256xf32, #tpu.memory_space<vmem>>, vector<1x64xf32>
    %c26 = arith.constant 26 : index
    %c0_13 = arith.constant 0 : index
    %15 = vector.load %arg1[%c26, %c0_13] : memref<35x256xf32, #tpu.memory_space<vmem>>, vector<1x64xf32>
    %16 = arith.truncf %6 : vector<16x64xf32> to vector<16x64xbf16>
    %c0_14 = arith.constant 0 : index
    %c0_15 = arith.constant 0 : index
    %c0_16 = arith.constant 0 : index
    %17 = vector.load %arg2[%c0_14, %c0_15, %c0_16] : memref<2x64x192xbf16, #tpu.memory_space<vmem>>, vector<1x64x192xbf16>
    %18 = vector.shape_cast %17 : vector<1x64x192xbf16> to vector<64x192xbf16>
    %cst = arith.constant dense<0.000000e+00> : vector<16x192xf32>
    %19 = tpu.matmul %16, %18, %cst {dimension_numbers = #tpu.dot_dimension_numbers<[1], [0], [0], [1], [0, 0, 1, 1], [], []>} : vector<16x64xbf16>, vector<64x192xbf16>, vector<16x192xf32> -> vector<16x192xf32>
    %20 = vector.broadcast %8 : vector<1x192xf32> to vector<16x192xf32>
    %21 = arith.addf %19, %20 : vector<16x192xf32>
    %22 = vector.extract_strided_slice %21 {offsets = [0, 0], sizes = [16, 32], strides = [1, 1]} : vector<16x192xf32> to vector<16x32xf32>
    %23 = vector.extract_strided_slice %21 {offsets = [0, 32], sizes = [16, 32], strides = [1, 1]} : vector<16x192xf32> to vector<16x32xf32>
    %24 = tpu.concatenate %22, %23 in 0 : vector<16x32xf32>, vector<16x32xf32> -> vector<32x32xf32>
    %25 = vector.extract_strided_slice %21 {offsets = [0, 64], sizes = [16, 32], strides = [1, 1]} : vector<16x192xf32> to vector<16x32xf32>
    %26 = vector.extract_strided_slice %21 {offsets = [0, 96], sizes = [16, 32], strides = [1, 1]} : vector<16x192xf32> to vector<16x32xf32>
    %27 = tpu.concatenate %25, %26 in 0 : vector<16x32xf32>, vector<16x32xf32> -> vector<32x32xf32>
    %28 = vector.extract_strided_slice %21 {offsets = [0, 128], sizes = [16, 32], strides = [1, 1]} : vector<16x192xf32> to vector<16x32xf32>
    %29 = vector.extract_strided_slice %21 {offsets = [0, 160], sizes = [16, 32], strides = [1, 1]} : vector<16x192xf32> to vector<16x32xf32>
    %30 = tpu.concatenate %28, %29 in 0 : vector<16x32xf32>, vector<16x32xf32> -> vector<32x32xf32>
    %31 = arith.truncf %24 : vector<32x32xf32> to vector<32x32xbf16>
    %32 = arith.truncf %27 : vector<32x32xf32> to vector<32x32xbf16>
    %cst_17 = arith.constant dense<0.000000e+00> : vector<32x32xf32>
    %33 = tpu.matmul %31, %32, %cst_17 {dimension_numbers = #tpu.dot_dimension_numbers<[1], [1], [0], [0], [0, 0, 1, 0], [], []>} : vector<32x32xbf16>, vector<32x32xbf16>, vector<32x32xf32> -> vector<32x32xf32>
    %cst_18 = arith.constant 0.176776692 : f32
    %34 = vector.broadcast %cst_18 : f32 to vector<32x32xf32>
    %35 = arith.mulf %33, %34 : vector<32x32xf32>
    %36 = arith.addf %35, %7 : vector<32x32xf32>
    %cst_19 = arith.constant dense<0xFF800000> : vector<32xf32>
    %37 = vector.multi_reduction <maximumf>, %36, %cst_19 [1] : vector<32x32xf32> to vector<32xf32>
    %38 = vector.shape_cast %37 : vector<32xf32> to vector<32x1xf32>
    %39 = vector.broadcast %38 : vector<32x1xf32> to vector<32x32xf32>
    %40 = arith.subf %36, %39 : vector<32x32xf32>
    %41 = math.exp %40 : vector<32x32xf32>
    %cst_20 = arith.constant dense<0.000000e+00> : vector<32xf32>
    %42 = vector.multi_reduction <add>, %41, %cst_20 [1] : vector<32x32xf32> to vector<32xf32>
    %43 = vector.shape_cast %42 : vector<32xf32> to vector<32x1xf32>
    %44 = tpu.reciprocal %43 {approx = true} : vector<32x1xf32> -> vector<32x1xf32>
    %45 = vector.broadcast %44 : vector<32x1xf32> to vector<32x32xf32>
    %46 = arith.mulf %41, %45 : vector<32x32xf32>
    %47 = arith.truncf %46 : vector<32x32xf32> to vector<32x32xbf16>
    %48 = arith.truncf %30 : vector<32x32xf32> to vector<32x32xbf16>
    %cst_21 = arith.constant dense<0.000000e+00> : vector<32x32xf32>
    %49 = tpu.matmul %47, %48, %cst_21 {dimension_numbers = #tpu.dot_dimension_numbers<[1], [0], [0], [1], [0, 0, 1, 1], [], []>} : vector<32x32xbf16>, vector<32x32xbf16>, vector<32x32xf32> -> vector<32x32xf32>
    %c0_22 = arith.constant 0 : index
    %c0_23 = arith.constant 0 : index
    %c0_24 = arith.constant 0 : index
    %50 = vector.load %arg3[%c0_22, %c0_23, %c0_24] : memref<2x64x64xbf16, #tpu.memory_space<vmem>>, vector<1x64x64xbf16>
    %51 = vector.shape_cast %50 : vector<1x64x64xbf16> to vector<64x64xbf16>
    %52 = vector.extract_strided_slice %49 {offsets = [0, 0], sizes = [16, 32], strides = [1, 1]} : vector<32x32xf32> to vector<16x32xf32>
    %53 = arith.truncf %52 : vector<16x32xf32> to vector<16x32xbf16>
    %54 = vector.extract_strided_slice %51 {offsets = [0, 0], sizes = [32, 64], strides = [1, 1]} : vector<64x64xbf16> to vector<32x64xbf16>
    %cst_25 = arith.constant dense<0.000000e+00> : vector<16x64xf32>
    %55 = tpu.matmul %53, %54, %cst_25 {dimension_numbers = #tpu.dot_dimension_numbers<[1], [0], [0], [1], [0, 0, 1, 1], [], []>} : vector<16x32xbf16>, vector<32x64xbf16>, vector<16x64xf32> -> vector<16x64xf32>
    %56 = vector.broadcast %9 : vector<1x64xf32> to vector<16x64xf32>
    %57 = arith.addf %56, %55 : vector<16x64xf32>
    %58 = vector.extract_strided_slice %49 {offsets = [16, 0], sizes = [16, 32], strides = [1, 1]} : vector<32x32xf32> to vector<16x32xf32>
    %59 = arith.truncf %58 : vector<16x32xf32> to vector<16x32xbf16>
    %60 = vector.extract_strided_slice %51 {offsets = [32, 0], sizes = [32, 64], strides = [1, 1]} : vector<64x64xbf16> to vector<32x64xbf16>
    %cst_26 = arith.constant dense<0.000000e+00> : vector<16x64xf32>
    %61 = tpu.matmul %59, %60, %cst_26 {dimension_numbers = #tpu.dot_dimension_numbers<[1], [0], [0], [1], [0, 0, 1, 1], [], []>} : vector<16x32xbf16>, vector<32x64xbf16>, vector<16x64xf32> -> vector<16x64xf32>
    %62 = arith.addf %57, %61 : vector<16x64xf32>
    %63 = arith.addf %6, %62 : vector<16x64xf32>
    %cst_27 = arith.constant dense<0.000000e+00> : vector<16xf32>
    %64 = vector.multi_reduction <add>, %63, %cst_27 [1] : vector<16x64xf32> to vector<16xf32>
    %65 = vector.shape_cast %64 : vector<16xf32> to vector<16x1xf32>
    %cst_28 = arith.constant 6.400000e+01 : f32
    %66 = vector.broadcast %cst_28 : f32 to vector<16x1xf32>
    %67 = arith.divf %65, %66 : vector<16x1xf32>
    %68 = vector.broadcast %67 : vector<16x1xf32> to vector<16x64xf32>
    %69 = arith.subf %63, %68 : vector<16x64xf32>
    %70 = arith.mulf %69, %69 : vector<16x64xf32>
    %cst_29 = arith.constant dense<0.000000e+00> : vector<16xf32>
    %71 = vector.multi_reduction <add>, %70, %cst_29 [1] : vector<16x64xf32> to vector<16xf32>
    %72 = vector.shape_cast %71 : vector<16xf32> to vector<16x1xf32>
    %cst_30 = arith.constant 6.400000e+01 : f32
    %73 = vector.broadcast %cst_30 : f32 to vector<16x1xf32>
    %74 = arith.divf %72, %73 : vector<16x1xf32>
    %cst_31 = arith.constant 9.99999974E-6 : f32
    %75 = vector.broadcast %cst_31 : f32 to vector<16x1xf32>
    %76 = arith.addf %74, %75 : vector<16x1xf32>
    %77 = math.rsqrt %76 : vector<16x1xf32>
    %78 = vector.broadcast %77 : vector<16x1xf32> to vector<16x64xf32>
    %79 = arith.mulf %69, %78 : vector<16x64xf32>
    %80 = vector.broadcast %10 : vector<1x64xf32> to vector<16x64xf32>
    %81 = arith.mulf %79, %80 : vector<16x64xf32>
    %82 = vector.broadcast %11 : vector<1x64xf32> to vector<16x64xf32>
    %83 = arith.addf %81, %82 : vector<16x64xf32>
    %84 = arith.truncf %83 : vector<16x64xf32> to vector<16x64xbf16>
    %c0_32 = arith.constant 0 : index
    %c0_33 = arith.constant 0 : index
    %c0_34 = arith.constant 0 : index
    %85 = vector.load %arg4[%c0_32, %c0_33, %c0_34] : memref<2x64x256xbf16, #tpu.memory_space<vmem>>, vector<1x64x256xbf16>
    %86 = vector.shape_cast %85 : vector<1x64x256xbf16> to vector<64x256xbf16>
    %cst_35 = arith.constant dense<0.000000e+00> : vector<16x256xf32>
    %87 = tpu.matmul %84, %86, %cst_35 {dimension_numbers = #tpu.dot_dimension_numbers<[1], [0], [0], [1], [0, 0, 1, 1], [], []>} : vector<16x64xbf16>, vector<64x256xbf16>, vector<16x256xf32> -> vector<16x256xf32>
    %88 = vector.broadcast %12 : vector<1x256xf32> to vector<16x256xf32>
    %89 = arith.addf %87, %88 : vector<16x256xf32>
    %cst_36 = arith.constant 0.000000e+00 : f32
    %90 = vector.broadcast %cst_36 : f32 to vector<16x256xf32>
    %91 = arith.maximumf %89, %90 : vector<16x256xf32>
    %92 = arith.truncf %91 : vector<16x256xf32> to vector<16x256xbf16>
    %c0_37 = arith.constant 0 : index
    %c0_38 = arith.constant 0 : index
    %c0_39 = arith.constant 0 : index
    %93 = vector.load %arg5[%c0_37, %c0_38, %c0_39] : memref<2x256x64xbf16, #tpu.memory_space<vmem>>, vector<1x256x64xbf16>
    %94 = vector.shape_cast %93 : vector<1x256x64xbf16> to vector<256x64xbf16>
    %cst_40 = arith.constant dense<0.000000e+00> : vector<16x64xf32>
    %95 = tpu.matmul %92, %94, %cst_40 {dimension_numbers = #tpu.dot_dimension_numbers<[1], [0], [0], [1], [0, 0, 1, 1], [], []>} : vector<16x256xbf16>, vector<256x64xbf16>, vector<16x64xf32> -> vector<16x64xf32>
    %96 = vector.broadcast %13 : vector<1x64xf32> to vector<16x64xf32>
    %97 = arith.addf %95, %96 : vector<16x64xf32>
    %98 = arith.addf %83, %97 : vector<16x64xf32>
    %cst_41 = arith.constant dense<0.000000e+00> : vector<16xf32>
    %99 = vector.multi_reduction <add>, %98, %cst_41 [1] : vector<16x64xf32> to vector<16xf32>
    %100 = vector.shape_cast %99 : vector<16xf32> to vector<16x1xf32>
    %cst_42 = arith.constant 6.400000e+01 : f32
    %101 = vector.broadcast %cst_42 : f32 to vector<16x1xf32>
    %102 = arith.divf %100, %101 : vector<16x1xf32>
    %103 = vector.broadcast %102 : vector<16x1xf32> to vector<16x64xf32>
    %104 = arith.subf %98, %103 : vector<16x64xf32>
    %105 = arith.mulf %104, %104 : vector<16x64xf32>
    %cst_43 = arith.constant dense<0.000000e+00> : vector<16xf32>
    %106 = vector.multi_reduction <add>, %105, %cst_43 [1] : vector<16x64xf32> to vector<16xf32>
    %107 = vector.shape_cast %106 : vector<16xf32> to vector<16x1xf32>
    %cst_44 = arith.constant 6.400000e+01 : f32
    %108 = vector.broadcast %cst_44 : f32 to vector<16x1xf32>
    %109 = arith.divf %107, %108 : vector<16x1xf32>
    %cst_45 = arith.constant 9.99999974E-6 : f32
    %110 = vector.broadcast %cst_45 : f32 to vector<16x1xf32>
    %111 = arith.addf %109, %110 : vector<16x1xf32>
    %112 = math.rsqrt %111 : vector<16x1xf32>
    %113 = vector.broadcast %112 : vector<16x1xf32> to vector<16x64xf32>
    %114 = arith.mulf %104, %113 : vector<16x64xf32>
    %115 = vector.broadcast %14 : vector<1x64xf32> to vector<16x64xf32>
    %116 = arith.mulf %114, %115 : vector<16x64xf32>
    %117 = vector.broadcast %15 : vector<1x64xf32> to vector<16x64xf32>
    %118 = arith.addf %116, %117 : vector<16x64xf32>
    %c27 = arith.constant 27 : index
    %c0_46 = arith.constant 0 : index
    %119 = vector.load %arg1[%c27, %c0_46] : memref<35x256xf32, #tpu.memory_space<vmem>>, vector<1x192xf32>
    %c28 = arith.constant 28 : index
    %c0_47 = arith.constant 0 : index
    %120 = vector.load %arg1[%c28, %c0_47] : memref<35x256xf32, #tpu.memory_space<vmem>>, vector<1x64xf32>
    %c29 = arith.constant 29 : index
    %c0_48 = arith.constant 0 : index
    %121 = vector.load %arg1[%c29, %c0_48] : memref<35x256xf32, #tpu.memory_space<vmem>>, vector<1x64xf32>
    %c30 = arith.constant 30 : index
    %c0_49 = arith.constant 0 : index
    %122 = vector.load %arg1[%c30, %c0_49] : memref<35x256xf32, #tpu.memory_space<vmem>>, vector<1x64xf32>
    %c31 = arith.constant 31 : index
    %c0_50 = arith.constant 0 : index
    %123 = vector.load %arg1[%c31, %c0_50] : memref<35x256xf32, #tpu.memory_space<vmem>>, vector<1x256xf32>
    %c32 = arith.constant 32 : index
    %c0_51 = arith.constant 0 : index
    %124 = vector.load %arg1[%c32, %c0_51] : memref<35x256xf32, #tpu.memory_space<vmem>>, vector<1x64xf32>
    %c33 = arith.constant 33 : index
    %c0_52 = arith.constant 0 : index
    %125 = vector.load %arg1[%c33, %c0_52] : memref<35x256xf32, #tpu.memory_space<vmem>>, vector<1x64xf32>
    %c34 = arith.constant 34 : index
    %c0_53 = arith.constant 0 : index
    %126 = vector.load %arg1[%c34, %c0_53] : memref<35x256xf32, #tpu.memory_space<vmem>>, vector<1x64xf32>
    %127 = arith.truncf %118 : vector<16x64xf32> to vector<16x64xbf16>
    %c1 = arith.constant 1 : index
    %c0_54 = arith.constant 0 : index
    %c0_55 = arith.constant 0 : index
    %128 = vector.load %arg2[%c1, %c0_54, %c0_55] : memref<2x64x192xbf16, #tpu.memory_space<vmem>>, vector<1x64x192xbf16>
    %129 = vector.shape_cast %128 : vector<1x64x192xbf16> to vector<64x192xbf16>
    %cst_56 = arith.constant dense<0.000000e+00> : vector<16x192xf32>
    %130 = tpu.matmul %127, %129, %cst_56 {dimension_numbers = #tpu.dot_dimension_numbers<[1], [0], [0], [1], [0, 0, 1, 1], [], []>} : vector<16x64xbf16>, vector<64x192xbf16>, vector<16x192xf32> -> vector<16x192xf32>
    %131 = vector.broadcast %119 : vector<1x192xf32> to vector<16x192xf32>
    %132 = arith.addf %130, %131 : vector<16x192xf32>
    %133 = vector.extract_strided_slice %132 {offsets = [0, 0], sizes = [16, 32], strides = [1, 1]} : vector<16x192xf32> to vector<16x32xf32>
    %134 = vector.extract_strided_slice %132 {offsets = [0, 32], sizes = [16, 32], strides = [1, 1]} : vector<16x192xf32> to vector<16x32xf32>
    %135 = tpu.concatenate %133, %134 in 0 : vector<16x32xf32>, vector<16x32xf32> -> vector<32x32xf32>
    %136 = vector.extract_strided_slice %132 {offsets = [0, 64], sizes = [16, 32], strides = [1, 1]} : vector<16x192xf32> to vector<16x32xf32>
    %137 = vector.extract_strided_slice %132 {offsets = [0, 96], sizes = [16, 32], strides = [1, 1]} : vector<16x192xf32> to vector<16x32xf32>
    %138 = tpu.concatenate %136, %137 in 0 : vector<16x32xf32>, vector<16x32xf32> -> vector<32x32xf32>
    %139 = vector.extract_strided_slice %132 {offsets = [0, 128], sizes = [16, 32], strides = [1, 1]} : vector<16x192xf32> to vector<16x32xf32>
    %140 = vector.extract_strided_slice %132 {offsets = [0, 160], sizes = [16, 32], strides = [1, 1]} : vector<16x192xf32> to vector<16x32xf32>
    %141 = tpu.concatenate %139, %140 in 0 : vector<16x32xf32>, vector<16x32xf32> -> vector<32x32xf32>
    %142 = arith.truncf %135 : vector<32x32xf32> to vector<32x32xbf16>
    %143 = arith.truncf %138 : vector<32x32xf32> to vector<32x32xbf16>
    %cst_57 = arith.constant dense<0.000000e+00> : vector<32x32xf32>
    %144 = tpu.matmul %142, %143, %cst_57 {dimension_numbers = #tpu.dot_dimension_numbers<[1], [1], [0], [0], [0, 0, 1, 0], [], []>} : vector<32x32xbf16>, vector<32x32xbf16>, vector<32x32xf32> -> vector<32x32xf32>
    %cst_58 = arith.constant 0.176776692 : f32
    %145 = vector.broadcast %cst_58 : f32 to vector<32x32xf32>
    %146 = arith.mulf %144, %145 : vector<32x32xf32>
    %147 = arith.addf %146, %7 : vector<32x32xf32>
    %cst_59 = arith.constant dense<0xFF800000> : vector<32xf32>
    %148 = vector.multi_reduction <maximumf>, %147, %cst_59 [1] : vector<32x32xf32> to vector<32xf32>
    %149 = vector.shape_cast %148 : vector<32xf32> to vector<32x1xf32>
    %150 = vector.broadcast %149 : vector<32x1xf32> to vector<32x32xf32>
    %151 = arith.subf %147, %150 : vector<32x32xf32>
    %152 = math.exp %151 : vector<32x32xf32>
    %cst_60 = arith.constant dense<0.000000e+00> : vector<32xf32>
    %153 = vector.multi_reduction <add>, %152, %cst_60 [1] : vector<32x32xf32> to vector<32xf32>
    %154 = vector.shape_cast %153 : vector<32xf32> to vector<32x1xf32>
    %155 = tpu.reciprocal %154 {approx = true} : vector<32x1xf32> -> vector<32x1xf32>
    %156 = vector.broadcast %155 : vector<32x1xf32> to vector<32x32xf32>
    %157 = arith.mulf %152, %156 : vector<32x32xf32>
    %158 = arith.truncf %157 : vector<32x32xf32> to vector<32x32xbf16>
    %159 = arith.truncf %141 : vector<32x32xf32> to vector<32x32xbf16>
    %cst_61 = arith.constant dense<0.000000e+00> : vector<32x32xf32>
    %160 = tpu.matmul %158, %159, %cst_61 {dimension_numbers = #tpu.dot_dimension_numbers<[1], [0], [0], [1], [0, 0, 1, 1], [], []>} : vector<32x32xbf16>, vector<32x32xbf16>, vector<32x32xf32> -> vector<32x32xf32>
    %c1_62 = arith.constant 1 : index
    %c0_63 = arith.constant 0 : index
    %c0_64 = arith.constant 0 : index
    %161 = vector.load %arg3[%c1_62, %c0_63, %c0_64] : memref<2x64x64xbf16, #tpu.memory_space<vmem>>, vector<1x64x64xbf16>
    %162 = vector.shape_cast %161 : vector<1x64x64xbf16> to vector<64x64xbf16>
    %163 = vector.extract_strided_slice %160 {offsets = [0, 0], sizes = [16, 32], strides = [1, 1]} : vector<32x32xf32> to vector<16x32xf32>
    %164 = arith.truncf %163 : vector<16x32xf32> to vector<16x32xbf16>
    %165 = vector.extract_strided_slice %162 {offsets = [0, 0], sizes = [32, 64], strides = [1, 1]} : vector<64x64xbf16> to vector<32x64xbf16>
    %cst_65 = arith.constant dense<0.000000e+00> : vector<16x64xf32>
    %166 = tpu.matmul %164, %165, %cst_65 {dimension_numbers = #tpu.dot_dimension_numbers<[1], [0], [0], [1], [0, 0, 1, 1], [], []>} : vector<16x32xbf16>, vector<32x64xbf16>, vector<16x64xf32> -> vector<16x64xf32>
    %167 = vector.broadcast %120 : vector<1x64xf32> to vector<16x64xf32>
    %168 = arith.addf %167, %166 : vector<16x64xf32>
    %169 = vector.extract_strided_slice %160 {offsets = [16, 0], sizes = [16, 32], strides = [1, 1]} : vector<32x32xf32> to vector<16x32xf32>
    %170 = arith.truncf %169 : vector<16x32xf32> to vector<16x32xbf16>
    %171 = vector.extract_strided_slice %162 {offsets = [32, 0], sizes = [32, 64], strides = [1, 1]} : vector<64x64xbf16> to vector<32x64xbf16>
    %cst_66 = arith.constant dense<0.000000e+00> : vector<16x64xf32>
    %172 = tpu.matmul %170, %171, %cst_66 {dimension_numbers = #tpu.dot_dimension_numbers<[1], [0], [0], [1], [0, 0, 1, 1], [], []>} : vector<16x32xbf16>, vector<32x64xbf16>, vector<16x64xf32> -> vector<16x64xf32>
    %173 = arith.addf %168, %172 : vector<16x64xf32>
    %174 = arith.addf %118, %173 : vector<16x64xf32>
    %cst_67 = arith.constant dense<0.000000e+00> : vector<16xf32>
    %175 = vector.multi_reduction <add>, %174, %cst_67 [1] : vector<16x64xf32> to vector<16xf32>
    %176 = vector.shape_cast %175 : vector<16xf32> to vector<16x1xf32>
    %cst_68 = arith.constant 6.400000e+01 : f32
    %177 = vector.broadcast %cst_68 : f32 to vector<16x1xf32>
    %178 = arith.divf %176, %177 : vector<16x1xf32>
    %179 = vector.broadcast %178 : vector<16x1xf32> to vector<16x64xf32>
    %180 = arith.subf %174, %179 : vector<16x64xf32>
    %181 = arith.mulf %180, %180 : vector<16x64xf32>
    %cst_69 = arith.constant dense<0.000000e+00> : vector<16xf32>
    %182 = vector.multi_reduction <add>, %181, %cst_69 [1] : vector<16x64xf32> to vector<16xf32>
    %183 = vector.shape_cast %182 : vector<16xf32> to vector<16x1xf32>
    %cst_70 = arith.constant 6.400000e+01 : f32
    %184 = vector.broadcast %cst_70 : f32 to vector<16x1xf32>
    %185 = arith.divf %183, %184 : vector<16x1xf32>
    %cst_71 = arith.constant 9.99999974E-6 : f32
    %186 = vector.broadcast %cst_71 : f32 to vector<16x1xf32>
    %187 = arith.addf %185, %186 : vector<16x1xf32>
    %188 = math.rsqrt %187 : vector<16x1xf32>
    %189 = vector.broadcast %188 : vector<16x1xf32> to vector<16x64xf32>
    %190 = arith.mulf %180, %189 : vector<16x64xf32>
    %191 = vector.broadcast %121 : vector<1x64xf32> to vector<16x64xf32>
    %192 = arith.mulf %190, %191 : vector<16x64xf32>
    %193 = vector.broadcast %122 : vector<1x64xf32> to vector<16x64xf32>
    %194 = arith.addf %192, %193 : vector<16x64xf32>
    %195 = arith.truncf %194 : vector<16x64xf32> to vector<16x64xbf16>
    %c1_72 = arith.constant 1 : index
    %c0_73 = arith.constant 0 : index
    %c0_74 = arith.constant 0 : index
    %196 = vector.load %arg4[%c1_72, %c0_73, %c0_74] : memref<2x64x256xbf16, #tpu.memory_space<vmem>>, vector<1x64x256xbf16>
    %197 = vector.shape_cast %196 : vector<1x64x256xbf16> to vector<64x256xbf16>
    %cst_75 = arith.constant dense<0.000000e+00> : vector<16x256xf32>
    %198 = tpu.matmul %195, %197, %cst_75 {dimension_numbers = #tpu.dot_dimension_numbers<[1], [0], [0], [1], [0, 0, 1, 1], [], []>} : vector<16x64xbf16>, vector<64x256xbf16>, vector<16x256xf32> -> vector<16x256xf32>
    %199 = vector.broadcast %123 : vector<1x256xf32> to vector<16x256xf32>
    %200 = arith.addf %198, %199 : vector<16x256xf32>
    %cst_76 = arith.constant 0.000000e+00 : f32
    %201 = vector.broadcast %cst_76 : f32 to vector<16x256xf32>
    %202 = arith.maximumf %200, %201 : vector<16x256xf32>
    %203 = arith.truncf %202 : vector<16x256xf32> to vector<16x256xbf16>
    %c1_77 = arith.constant 1 : index
    %c0_78 = arith.constant 0 : index
    %c0_79 = arith.constant 0 : index
    %204 = vector.load %arg5[%c1_77, %c0_78, %c0_79] : memref<2x256x64xbf16, #tpu.memory_space<vmem>>, vector<1x256x64xbf16>
    %205 = vector.shape_cast %204 : vector<1x256x64xbf16> to vector<256x64xbf16>
    %cst_80 = arith.constant dense<0.000000e+00> : vector<16x64xf32>
    %206 = tpu.matmul %203, %205, %cst_80 {dimension_numbers = #tpu.dot_dimension_numbers<[1], [0], [0], [1], [0, 0, 1, 1], [], []>} : vector<16x256xbf16>, vector<256x64xbf16>, vector<16x64xf32> -> vector<16x64xf32>
    %207 = vector.broadcast %124 : vector<1x64xf32> to vector<16x64xf32>
    %208 = arith.addf %206, %207 : vector<16x64xf32>
    %209 = arith.addf %194, %208 : vector<16x64xf32>
    %cst_81 = arith.constant dense<0.000000e+00> : vector<16xf32>
    %210 = vector.multi_reduction <add>, %209, %cst_81 [1] : vector<16x64xf32> to vector<16xf32>
    %211 = vector.shape_cast %210 : vector<16xf32> to vector<16x1xf32>
    %cst_82 = arith.constant 6.400000e+01 : f32
    %212 = vector.broadcast %cst_82 : f32 to vector<16x1xf32>
    %213 = arith.divf %211, %212 : vector<16x1xf32>
    %214 = vector.broadcast %213 : vector<16x1xf32> to vector<16x64xf32>
    %215 = arith.subf %209, %214 : vector<16x64xf32>
    %216 = arith.mulf %215, %215 : vector<16x64xf32>
    %cst_83 = arith.constant dense<0.000000e+00> : vector<16xf32>
    %217 = vector.multi_reduction <add>, %216, %cst_83 [1] : vector<16x64xf32> to vector<16xf32>
    %218 = vector.shape_cast %217 : vector<16xf32> to vector<16x1xf32>
    %cst_84 = arith.constant 6.400000e+01 : f32
    %219 = vector.broadcast %cst_84 : f32 to vector<16x1xf32>
    %220 = arith.divf %218, %219 : vector<16x1xf32>
    %cst_85 = arith.constant 9.99999974E-6 : f32
    %221 = vector.broadcast %cst_85 : f32 to vector<16x1xf32>
    %222 = arith.addf %220, %221 : vector<16x1xf32>
    %223 = math.rsqrt %222 : vector<16x1xf32>
    %224 = vector.broadcast %223 : vector<16x1xf32> to vector<16x64xf32>
    %225 = arith.mulf %215, %224 : vector<16x64xf32>
    %226 = vector.broadcast %125 : vector<1x64xf32> to vector<16x64xf32>
    %227 = arith.mulf %225, %226 : vector<16x64xf32>
    %228 = vector.broadcast %126 : vector<1x64xf32> to vector<16x64xf32>
    %229 = arith.addf %227, %228 : vector<16x64xf32>
    %230 = vector.extract_strided_slice %229 {offsets = [0, 0], sizes = [8, 64], strides = [1, 1]} : vector<16x64xf32> to vector<8x64xf32>
    %cst_86 = arith.constant dense<0.000000e+00> : vector<64xf32>
    %231 = vector.multi_reduction <add>, %230, %cst_86 [0] : vector<8x64xf32> to vector<64xf32>
    %232 = vector.shape_cast %231 : vector<64xf32> to vector<1x64xf32>
    %cst_87 = arith.constant 8.000000e+00 : f32
    %233 = vector.broadcast %cst_87 : f32 to vector<1x64xf32>
    %234 = arith.divf %232, %233 : vector<1x64xf32>
    %235 = vector.extract_strided_slice %229 {offsets = [8, 0], sizes = [8, 64], strides = [1, 1]} : vector<16x64xf32> to vector<8x64xf32>
    %cst_88 = arith.constant dense<0.000000e+00> : vector<64xf32>
    %236 = vector.multi_reduction <add>, %235, %cst_88 [0] : vector<8x64xf32> to vector<64xf32>
    %237 = vector.shape_cast %236 : vector<64xf32> to vector<1x64xf32>
    %cst_89 = arith.constant 8.000000e+00 : f32
    %238 = vector.broadcast %cst_89 : f32 to vector<1x64xf32>
    %239 = arith.divf %237, %238 : vector<1x64xf32>
    %240 = tpu.concatenate %234, %239 in 0 : vector<1x64xf32>, vector<1x64xf32> -> vector<2x64xf32>
    %c1_90 = arith.constant 1 : index
    %c0_91 = arith.constant 0 : index
    %241 = vector.load %arg1[%c1_90, %c0_91] : memref<35x256xf32, #tpu.memory_space<vmem>>, vector<1x64xf32>
    %c2 = arith.constant 2 : index
    %c0_92 = arith.constant 0 : index
    %242 = vector.load %arg1[%c2, %c0_92] : memref<35x256xf32, #tpu.memory_space<vmem>>, vector<1x1xf32>
    %243 = vector.broadcast %241 : vector<1x64xf32> to vector<2x64xf32>
    %244 = arith.mulf %240, %243 : vector<2x64xf32>
    %cst_93 = arith.constant dense<0.000000e+00> : vector<2xf32>
    %245 = vector.multi_reduction <add>, %244, %cst_93 [1] : vector<2x64xf32> to vector<2xf32>
    %246 = vector.shape_cast %245 : vector<2xf32> to vector<2x1xf32>
    %247 = vector.broadcast %242 : vector<1x1xf32> to vector<2x1xf32>
    %248 = arith.addf %246, %247 : vector<2x1xf32>
    %c0_94 = arith.constant 0 : index
    %c0_95 = arith.constant 0 : index
    %249 = vector.load %arg7[%c0_94, %c0_95] : memref<2x1xf32, #tpu.memory_space<vmem>>, vector<2x1xf32>
    tpu.vector_store %arg7[%c0_94, %c0_95], %248 {strides = array<i32>} : memref<2x1xf32, #tpu.memory_space<vmem>>, vector<2x1xf32>,
    return
  }
}

</mosaic_0001>

<bundles_post_ra>
// kernel: transformer_forward.1
= control target key start
LH: loop header
LB: loop body
LE: loop exit
PB: predicated region body
PF: predicated region fallthrough
CT: control target
= control target key end

     0   :  { %v2118_v0 = vmov 0   ;;  %vm48_vm0 = vcmask 1044480   ;;  %vm132_vm1 = vcmask 523264   ;;  %v82_v27 = vlaneseq  ;;  %s2119_s30 = smov 96   ;;  %s2120_s8 = smov 64   ;;  %s2619_s0 = inlined_call_operand.vmem [shape: f32[16,1], index: 0, kind: input, shape index: {}]   ;;  %s2620_s2 = inlined_call_operand.vmem [shape: bf16[2,64,192], index: 2, kind: input, shape index: {}]   ;;  %s2621_s1 = inlined_call_operand.vmem [shape: f32[35,256], index: 1, kind: input, shape index: {}]   ;;  %s2622_s6 = inlined_call_operand.vmem [shape: f32[32,32], index: 6, kind: input, shape index: {}]   ;;  %s2623_s3 = inlined_call_operand.vmem [shape: bf16[2,64,64], index: 3, kind: input, shape index: {}]   ;;  %s2624_s4 = inlined_call_operand.vmem [shape: bf16[2,64,256], index: 4, kind: input, shape index: {}]   ;;  %s2625_s5 = inlined_call_operand.vmem [shape: bf16[2,256,64], index: 5, kind: input, shape index: {}]   ;;  %s2626_s7 = inlined_call_operand.vmem [shape: f32[2,1], index: 7, kind: output, shape index: {}]  }
   0x1   :  { %1961 = vset.pattern.permute.xlu0 %v2118_v0  ;;  %v31_v1 = vld [vmem:[%s2619_s0] sm:$0xff]  ;;  %v32_v2 = vld [vmem:[%s2619_s0 + $0x8] sm:$0xff]  ;;  %168 = vmatprep.mubr.bf16.mxu0 %v2118_v0  ;;  %v1985_v5 = vld [vmem:[%s2620_s2 + $0x14] ss:$8 sps:$4 sm:$0xff]   ;;  %vm203_vm2 = vcmask 261120   ;;  %vm2122_vm3 = vmmov 0  }
   0x2   :  { %35 = vperm.xlu0 %1961, %v31_v1   ;;  %v1982_v3 = vld [vmem:[%s2620_s2 + $0x4] ss:$8 sps:$4 sm:$0xff]   ;;  %v1984_v4 = vld [vmem:[%s2620_s2] ss:$8 sps:$4 sm:$0xff]   ;;  %v1987_v6 = vld [vmem:[%s2620_s2 + $0x10] ss:$8 sps:$4 sm:$0xff]  }
   0x3   :  { %136 = vmatprep.subr.bf16.mxu0 %v1982_v3  ;;  %v1988_v7 = vld [vmem:[%s2620_s2 + $0x24] ss:$8 sps:$4 sm:$0xff]   ;;  %v1990_v8 = vld [vmem:[%s2620_s2 + $0x20] ss:$8 sps:$4 sm:$0xff]   ;;  %v1991_v9 = vld [vmem:[%s2620_s2 + $0x34] ss:$8 sps:$4 sm:$0xff]  }
   0x4   :  { %137 = vmatpush1.bf16.msra.mxu0 %v1984_v4  ;;  %v1993_v10 = vld [vmem:[%s2620_s2 + $0x30] ss:$8 sps:$4 sm:$0xff]   ;;  %v28_v11 = vld [vmem:[%s2621_s1] sm:$0xf8]  ;;  %v30_v13 = vld [vmem:[%s2621_s1 + $0x20] sm:$0x7] }
   0x5   :  { %138 = vmatprep.subr.bf16.mxu0 %v1985_v5  ;;  %v29_v12 = vld [vmem:[%s2621_s1 + $0x10] sm:$0xff]  ;;  %v27_v14 = vld [vmem:[%s2621_s1] ss:$0 sm:$0xff]  ;;  %v49_v15 = vrot.slane %v28_v11, 3  ;;  %v52_v18 = vrot.slane %v30_v13, 3  ;;  %v83_v28 = vshrl.u32 %v82_v27, 7 }
   0x6   :  { %40 = vperm.xlu0 %1961, %v32_v2   ;;  %v50_v16 = vrot.slane %v29_v12, 3  ;;  %v1668_v30 = vld [vmem:[%s2621_s1 + $0x23] ss:$8 sm:$0x3]  ;;  %v2254_v62 = vld [vmem:[%s2622_s6 + $0x18] sm:$0xff]  ;;  %v2260_v3 = vld [vmem:[%s2622_s6 + $0x10] sm:$0xff] }
   0x7   :  { %v2214_v29 = vsub.s32 0, %v83_v28  ;;  %v2219_v31 = vsub.s32 1, %v83_v28  ;;  %v2244_v56 = vld [vmem:[%s2622_s6] sm:$0xff]  ;;  %v2249_v61 = vld [vmem:[%s2622_s6 + $0x8] sm:$0xff]  ;;  %vm1652_vm4 = vcmask 1040384   ;;  %vm1657_vm5 = vcmask 517120  }
   0x8   :  { %139 = vmatpush1.bf16.msra.mxu0 %v1987_v6  ;;  %v51_v20 = vsel %vm48_vm0, %v49_v15, %v50_v16  ;;  %v53_v21 = vsel %vm48_vm0, %v50_v16, %v52_v18  ;;  %vm1662_vm6 = vcmask 1024  }
   0x9   :  { %140 = vmatprep.subr.bf16.mxu0 %v1988_v7  ;;  %v85_v32 = vrot.slane %v1668_v30, %v2214_v29  ;;  %v89_v34 = vrot.slane %v1668_v30, %v2219_v31 }
   0xc   :  { %141 = vmatpush1.bf16.msra.mxu0 %v1990_v8 }
   0xd   :  { %142 = vmatprep.subr.bf16.mxu0 %v1991_v9 }
  0x10   :  { %143 = vmatpush1.bf16.msra.mxu0 %v1993_v10 }
  0x81   :  { %v36_v17 = vpop.permute.xlu0 %35 }
  0x82   :  { %v43_v19 = vmul.f32 %v36_v17, %v27_v14 }
  0x84   :  { %v2207_v24 = vadd.f32 %v51_v20, %v43_v19 }
  0x85   :  { %v41_v22 = vpop.permute.xlu0 %40 }
  0x86   :  { %v44_v23 = vmul.f32 %v41_v22, %v27_v14 }
  0x88   :  { %v2209_v25 = vadd.f32 %v53_v21, %v44_v23 }
  0x8a   :  { %v72_v26 = vpack.c.bf16 %v2209_v25, %v2207_v24 }
  0x8c   :  { %1678 = vmatmul.mubr.msk.bf16.vlgmr.msra.gmra.mrb[0].mxu0 %vm132_vm1, %v72_v26 }
 0x15f   :  { %v170_v33 = vpop.f32.mrb[0].mxu0 }
 0x160   :  { %v172_v35 = vpop.f32.mrb[1].mxu0  ;;  %v171_v37 = vadd.f32 %v170_v33, %v85_v32 }
 0x161   :  { %v174_v36 = vpop.f32.mrb[2].mxu0  ;;  %v2223_v40 = vadd.f32 %v172_v35, %v89_v34 }
 0x162   :  { %v175_v38 = vadd.f32 %v174_v36, %v85_v32  ;;  %v176_v39 = vpop.f32.mrb[3].mxu0 }
 0x163   :  { %v2225_v41 = vadd.f32 %v176_v39, %v89_v34 }
 0x164   :  { %v1962_v42 = vpack.i.bf16 %v175_v38, %v171_v37  ;;  %v195_v43 = vpack.c.bf16 %v175_v38, %v171_v37 }
 0x165   :  { %v1967_v44 = vpack.i.bf16 %v2225_v41, %v2223_v40  ;;  %v319_v45 = vpack.c.bf16 %v2225_v41, %v2223_v40 }
 0x166   :  { %1963 = vrot.lane.b32.xlu1 %v1962_v42, %s2119_s30  ;;  %1892 = vmatprep.mubr.msk.bf16.mxu1 %vm203_vm2, %v195_v43 }
 0x167   :  { %1896 = vmatprep.subr.bf16.mxu0 %v319_v45 }
 0x168   :  { %1897 = vmatpush3.bf16.msra.mxu0 %v319_v45 }
 0x16a   :  { %199 = vrot.lane.b32.xlu1 %v195_v43, %s2120_s8 }
 0x1d8   :  { %v1964_v46 = vpop.permute.xlu1 %1963 }
 0x1d9   :  { %v1966_v47 = vunpack.i.h.bf16 %v1964_v46  ;;  %v1965_v48 = vunpack.i.l.bf16 %v1964_v46 }
 0x1db   :  { %v196_v49 = vpack.c.bf16 %v1966_v47, %v1965_v48 }
 0x1dc   :  { %v200_v50 = vpop.permute.xlu1 %199 }
 0x1dd   :  { %201 = vrot.lane.b32.xlu0 %v196_v49, %s2120_s8  ;;  %1952 = vmatprep.subr.msk.bf16.mxu1 %vm203_vm2, %v200_v50  ;;  %v211_v51 = vsel %vm203_vm2, %v200_v50, 0 }
 0x1de   :  { %1889 = vmatpush3.bf16.xpose.msra.mxu1 %v211_v51 }
 0x24f   :  { %v202_v52 = vpop.permute.xlu0 %201 }
 0x250   :  { %1953 = vmatprep.subr.msk.bf16.mxu1 %vm203_vm2, %v202_v52  ;;  %v214_v53 = vsel %vm203_vm2, %v202_v52, 0 }
 0x251   :  { %1891 = vmatpush3.bf16.xpose.msra.mxu1 %v214_v53  ;;  %v1994_v53 = vld [vmem:[%s2623_s3] sm:$0xff]  }
 0x258   :  { %1893 = vmatmul.mubr.msk.bf16.vlgmr.msra.gmra.mrb[0].mxu1 %vm203_vm2, %v196_v49 }
 0x259   :  { %630 = vmatprep.mubr.bf16.mxu1 %v2118_v0 }
 0x32b   :  { %v1894_v54 = vpop.f32.mrb[0].mxu1 }
 0x32c   :  { %v250_v55 = vpop.f32.mrb[1].mxu1  ;;  %v267_v63 = vmul.f32 0.17677669, %v1894_v54 }
 0x32d   :  { %v265_v57 = vmul.f32 0.17677669, %v250_v55  ;;  %v1895_v58 = vpop.f32.mrb[2].mxu1  ;;  %v1995_v55 = vld [vmem:[%s2623_s3 + $0x8] sm:$0xff]  }
 0x32e   :  { %v268_v59 = vmul.f32 0.17677669, %v1895_v58  ;;  %v253_v60 = vpop.f32.mrb[3].mxu1  ;;  %v271_v8 = vadd.f32 %v267_v63, %v2260_v3 }
 0x32f   :  { %v266_v1 = vmul.f32 0.17677669, %v253_v60  ;;  %v269_v2 = vadd.f32 %v265_v57, %v2244_v56 }
 0x330   :  { %v272_v6 = vadd.f32 %v268_v59, %v2254_v62  ;;  %v279_v10 = vsel %vm203_vm2, %v271_v8, -inf }
 0x331   :  { %v273_v4 = vsel %vm203_vm2, %v269_v2, -inf  ;;  %v270_v5 = vadd.f32 %v266_v1, %v2249_v61  ;;  %v1996_v1 = vld [vmem:[%s2623_s3 + $0x10] sm:$0xff]  }
 0x332   :  { %274 = vmax.xlane.f32.xlu1 %v273_v4  ;;  %v282_v9 = vsel %vm203_vm2, %v272_v6, -inf  ;;  %v1997_v4 = vld [vmem:[%s2623_s3 + $0x18] sm:$0xff]  }
 0x333   :  { %v276_v7 = vsel %vm203_vm2, %v270_v5, -inf }
 0x334   :  { %277 = vmax.xlane.f32.xlu0 %v276_v7 }
 0x336   :  { %283 = vmax.xlane.f32.xlu1 %v282_v9  ;;  %v64_v9 = vld [vmem:[%s2621_s1 + $0x24] ss:$0 sm:$0xff] }
 0x338   :  { %280 = vmax.xlane.f32.xlu0 %v279_v10 }
 0x3bf   :  { %v275_v11 = vpop.xlane.xlu1 %274 }
 0x3c0   :  { %v285_v15 = vsub.f32 %v269_v2, %v275_v11 }
 0x3c1   :  { %v278_v12 = vpop.xlane.xlu0 %277 }
 0x3c2   :  { %v286_v13 = vsub.f32 %v270_v5, %v278_v12  ;;  %v289_v21 = vmul.f32 1.442695, %v285_v15 }
 0x3c3   :  { %v284_v14 = vpop.xlane.xlu1 %283 }
 0x3c4   :  { %v291_v16 = vmul.f32 1.442695, %v286_v13  ;;  %v288_v17 = vsub.f32 %v272_v6, %v284_v14 }
 0x3c5   :  { %v281_v18 = vpop.xlane.xlu0 %280 }
 0x3c6   :  { %2070 = vpow2.f32 %v291_v16  ;;  %v295_v19 = vmul.f32 1.442695, %v288_v17  ;;  %v287_v20 = vsub.f32 %v271_v8, %v281_v18 }
 0x3c8   :  { %2072 = vpow2.f32 %v295_v19  ;;  %v293_v22 = vmul.f32 1.442695, %v287_v20 }
 0x3ca   :  { %2074 = vpow2.f32 %v293_v22 }
 0x3cb   :  { %2076 = vpow2.f32 %v289_v21 }
 0x3d0   :  { %v2071_v23 = vpop.eup %2070 }
 0x3d1   :  { %v300_v26 = vsel %vm203_vm2, %v2071_v23, 0.0 }
 0x3d2   :  { %v2073_v27 = vpop.eup %2072  ;;  %301 = vadd.xlane.f32.xlu1 %v300_v26 }
 0x3d3   :  { %v306_v30 = vsel %vm203_vm2, %v2073_v27, 0.0 }
 0x3d4   :  { %v2075_v28 = vpop.eup %2074 }
 0x3d5   :  { %v303_v32 = vsel %vm203_vm2, %v2075_v28, 0.0  ;;  %v2077_v33 = vpop.eup %2076 }
 0x3d6   :  { %307 = vadd.xlane.f32.xlu1 %v306_v30  ;;  %304 = vadd.xlane.f32.xlu0 %v303_v32  ;;  %v297_v34 = vsel %vm203_vm2, %v2077_v33, 0.0 }
 0x3da   :  { %298 = vadd.xlane.f32.xlu0 %v297_v34 }
 0x3f0   :  { %1968 = vrot.lane.b32.xlu0 %v1967_v44, %s2119_s30  ;;  %v2121_v44 = vmov 0.0  }
 0x45f   :  { %v302_v35 = vpop.xlane.xlu1 %301 }
 0x463   :  { %v308_v36 = vpop.xlane.xlu1 %307  ;;  %v305_v37 = vpop.xlane.xlu0 %304 }
 0x464   :  { %2078 = vrcp.f32 %v308_v36  ;;  %v2003_v36 = vld [vmem:[%s2624_s4 + $0x14] ss:$8 sps:$4 sm:$0xff]  }
 0x465   :  { %2080 = vrcp.f32 %v305_v37  ;;  %v2001_v37 = vld [vmem:[%s2624_s4 + $0x10] ss:$8 sps:$4 sm:$0xff]  }
 0x466   :  { %2082 = vrcp.f32 %v302_v35  ;;  %v1998_v35 = vld [vmem:[%s2624_s4] ss:$8 sps:$4 sm:$0xff]  }
 0x467   :  { %v299_v38 = vpop.xlane.xlu0 %298 }
 0x468   :  { %2084 = vrcp.f32 %v299_v38  ;;  %v2006_v38 = vld [vmem:[%s2624_s4 + $0x24] ss:$8 sps:$4 sm:$0xff]  }
 0x46b   :  { %v1969_v39 = vpop.permute.xlu0 %1968 }
 0x46c   :  { %v1971_v42 = vunpack.i.h.bf16 %v1969_v39  ;;  %v1970_v43 = vunpack.i.l.bf16 %v1969_v39  ;;  %v2004_v39 = vld [vmem:[%s2624_s4 + $0x20] ss:$8 sps:$4 sm:$0xff]  }
 0x46e   :  { %v2079_v45 = vpop.eup %2078  ;;  %v320_v46 = vpack.c.bf16 %v1971_v42, %v1970_v43  ;;  %v2007_v42 = vld [vmem:[%s2624_s4 + $0x30] ss:$8 sps:$4 sm:$0xff]   ;;  %v2009_v43 = vld [vmem:[%s2624_s4 + $0x34] ss:$8 sps:$4 sm:$0xff]  }
 0x46f   :  { %v2081_v47 = vpop.eup %2080  ;;  %v316_v40 = vmul.f32 %v2079_v45, %v2073_v27  ;;  %v2010_v45 = vld [vmem:[%s2625_s5 + $0x40] sm:$0xff]  }
 0x470   :  { %v2083_v48 = vpop.eup %2082  ;;  %1898 = vmatprep.subr.bf16.mxu0 %v320_v46  ;;  %v315_v41 = vmul.f32 %v2081_v47, %v2075_v28  ;;  %v2012_v47 = vld [vmem:[%s2625_s5 + $0x48] sm:$0xff]  }
 0x471   :  { %1899 = vmatpush3.bf16.msra.mxu0 %v320_v46  ;;  %v314_v51 = vmul.f32 %v2083_v48, %v2071_v23  ;;  %v2011_v46 = vld [vmem:[%s2625_s5] sm:$0xff]   ;;  %v2013_v48 = vld [vmem:[%s2625_s5 + $0x8] sm:$0xff]  }
 0x472   :  { %v2085_v49 = vpop.eup %2084  ;;  %1904 = vmatprep.subr.bf16.mxu0 %v2121_v44  ;;  %v318_v54 = vpack.c.bf16 %v316_v40, %v315_v41  ;;  %v2015_v40 = vld [vmem:[%s2625_s5 + $0x10] sm:$0xff]   ;;  %v2016_v41 = vld [vmem:[%s2625_s5 + $0x58] sm:$0xff]  }
 0x473   :  { %v313_v50 = vmul.f32 %v2085_v49, %v2077_v33  ;;  %v2014_v49 = vld [vmem:[%s2625_s5 + $0x50] sm:$0xff]  }
 0x475   :  { %v317_v52 = vpack.c.bf16 %v314_v51, %v313_v50  ;;  %v2017_v50 = vld [vmem:[%s2625_s5 + $0x18] sm:$0xff]   ;;  %v2018_v51 = vld [vmem:[%s2625_s5 + $0x60] sm:$0xff]  }
 0x477   :  { %1900 = vmatprep.mubr.msk.bf16.mxu0 %vm203_vm2, %v317_v52  ;;  %v2019_v52 = vld [vmem:[%s2625_s5 + $0x20] sm:$0xff]  }
 0x478   :  { %1901 = vmatmul.mubr.msk.bf16.vlgmr.msra.gmra.mrb[4].mxu0 %vm203_vm2, %v318_v54 }
 0x479   :  { %1905 = vmatpush3.bf16.msra.mxu0 %v1994_v53  ;;  %1908 = vmatprep.mubr.msk.bf16.mxu0 %vm2122_vm3, %v2121_v44  ;;  %v2020_v53 = vld [vmem:[%s2625_s5 + $0x68] sm:$0xff]  }
 0x47a   :  { %1906 = vmatprep.subr.bf16.mxu0 %v2121_v44 }
 0x47d   :  { %1907 = vmatpush3.bf16.msra.mxu0 %v1995_v55 }
 0x47e   :  { %1912 = vmatprep.subr.bf16.mxu0 %v2121_v44 }
 0x54b   :  { %v1902_v57 = vpop.f32.mrb[4].mxu0 }
 0x54c   :  { %v361_v58 = vpop.f32.mrb[5].mxu0 }
 0x54d   :  { %v1903_v59 = vpop.f32.mrb[6].mxu0 }
 0x54e   :  { %v443_v60 = vpack.c.bf16 %v1903_v59, %v1902_v57  ;;  %v364_v63 = vpop.f32.mrb[7].mxu0 }
 0x54f   :  { %v384_v2 = vpack.c.bf16 %v364_v63, %v361_v58 }
 0x551   :  { %1909 = vmatmul.mubr.msk.bf16.vlgmr.msra.gmra.mrb[8].mxu0 %vm203_vm2, %v384_v2  ;;  %v65_v2 = vld [vmem:[%s2621_s1 + $0x25] ss:$0 sm:$0xff] }
 0x552   :  { %1913 = vmatpush3.bf16.msra.mxu0 %v1996_v1  ;;  %1916 = vmatprep.mubr.msk.bf16.mxu0 %vm2122_vm3, %v2121_v44 }
 0x553   :  { %1914 = vmatprep.subr.bf16.mxu0 %v2121_v44 }
 0x556   :  { %1915 = vmatpush3.bf16.msra.mxu0 %v1997_v4 }
 0x557   :  { %1830 = vmatprep.subr.bf16.mxu0 %v2010_v45 }
 0x559   :  { %1917 = vmatmul.mubr.msk.bf16.vlgmr.msra.gmra.mrb[12].mxu0 %vm203_vm2, %v443_v60 }
 0x55a   :  { %1831 = vmatpush3.bf16.msra.mxu0 %v2011_v46 }
 0x55b   :  { %1832 = vmatprep.subr.bf16.mxu0 %v2012_v47 }
 0x55e   :  { %1833 = vmatpush3.bf16.msra.mxu0 %v2013_v48 }
 0x55f   :  { %1834 = vmatprep.subr.bf16.mxu0 %v2014_v49 }
 0x562   :  { %1835 = vmatpush3.bf16.msra.mxu0 %v2015_v40 }
 0x563   :  { %1836 = vmatprep.subr.bf16.mxu0 %v2016_v41 }
 0x566   :  { %1837 = vmatpush3.bf16.msra.mxu0 %v2017_v50 }
 0x567   :  { %1838 = vmatprep.subr.bf16.mxu0 %v2018_v51 }
 0x56a   :  { %1839 = vmatpush3.bf16.msra.mxu0 %v2019_v52 }
 0x56b   :  { %1840 = vmatprep.subr.bf16.mxu0 %v2020_v53 }
 0x624   :  { %v434_v5 = vpop.f32.mrb[8].mxu0 }
 0x625   :  { %v1910_v6 = vpop.f32.mrb[9].mxu0  ;;  %v441_v10 = vadd.f32 %v434_v5, %v64_v9 }
 0x626   :  { %v437_v7 = vpop.f32.mrb[10].mxu0 }
 0x627   :  { %v1911_v8 = vpop.f32.mrb[11].mxu0  ;;  %v442_v12 = vadd.f32 %v437_v7, %v64_v9  ;;  %v66_v7 = vld [vmem:[%s2621_s1 + $0x26] ss:$0 sm:$0xff] }
 0x62c   :  { %v493_v11 = vpop.f32.mrb[12].mxu0 }
 0x62d   :  { %v500_v13 = vadd.f32 %v493_v11, %v441_v10  ;;  %v1918_v14 = vpop.f32.mrb[13].mxu0 }
 0x62e   :  { %v496_v15 = vpop.f32.mrb[14].mxu0  ;;  %v2023_v14 = vld [vmem:[%s2625_s5 + $0x30] sm:$0xff]  }
 0x62f   :  { %v501_v16 = vadd.f32 %v496_v15, %v442_v12  ;;  %v1919_v17 = vpop.f32.mrb[15].mxu0  ;;  %v502_v18 = vadd.f32 %v500_v13, %v2207_v24  ;;  %v2021_v12 = vld [vmem:[%s2625_s5 + $0x28] sm:$0xff]   ;;  %v2022_v13 = vld [vmem:[%s2625_s5 + $0x70] sm:$0xff]   ;;  %v2024_v15 = vld [vmem:[%s2625_s5 + $0x78] sm:$0xff]  }
 0x630   :  { %1841 = vmatpush3.bf16.msra.mxu0 %v2021_v12  ;;  %v1669_v17 = vld [vmem:[%s2621_s1 + $0x27] ss:$8 sm:$0x3] }
 0x631   :  { %v504_v19 = vsel %vm132_vm1, %v502_v18, 0.0  ;;  %v503_v20 = vadd.f32 %v501_v16, %v2209_v25  ;;  %v2000_v25 = vld [vmem:[%s2624_s4 + $0x4] ss:$8 sps:$4 sm:$0xff]   ;;  %1842 = vmatprep.subr.bf16.mxu0 %v2022_v13  ;;  %v2025_v16 = vld [vmem:[%s2625_s5 + $0x38] sm:$0xff]  }
 0x632   :  { %505 = vadd.xlane.f32.xlu1 %v504_v19  ;;  %598 = vmatprep.subr.bf16.mxu1 %v2000_v25  ;;  %v552_v19 = vrot.slane %v1669_v17, %v2219_v31 }
 0x633   :  { %v507_v21 = vsel %vm132_vm1, %v503_v20, 0.0  ;;  %599 = vmatpush1.bf16.msra.mxu1 %v1998_v35 }
 0x634   :  { %600 = vmatprep.subr.bf16.mxu1 %v2003_v36  ;;  %1843 = vmatpush3.bf16.msra.mxu0 %v2023_v14 }
 0x635   :  { %1844 = vmatprep.subr.bf16.mxu0 %v2024_v15 }
 0x636   :  { %508 = vadd.xlane.f32.xlu1 %v507_v21 }
 0x637   :  { %601 = vmatpush1.bf16.msra.mxu1 %v2001_v37  ;;  %v69_v37 = vld [vmem:[%s2621_s1 + $0x30] ss:$0 sm:$0xff] }
 0x638   :  { %602 = vmatprep.subr.bf16.mxu1 %v2006_v38  ;;  %1845 = vmatpush3.bf16.msra.mxu0 %v2025_v16 }
 0x63b   :  { %603 = vmatpush1.bf16.msra.mxu1 %v2004_v39 }
 0x63c   :  { %604 = vmatprep.subr.bf16.mxu1 %v2009_v43 }
 0x63f   :  { %605 = vmatpush1.bf16.msra.mxu1 %v2007_v42 }
 0x6bf   :  { %v506_v22 = vpop.xlane.xlu1 %505 }
 0x6c0   :  { %v511_v23 = vmul.f32 0.015625, %v506_v22 }
 0x6c2   :  { %v513_v26 = vsub.f32 %v502_v18, %v511_v23  ;;  %v548_v18 = vrot.slane %v1669_v17, %v2214_v29  ;;  %v70_v17 = vld [vmem:[%s2621_s1 + $0x31] ss:$0 sm:$0xff] }
 0x6c3   :  { %v509_v27 = vpop.xlane.xlu1 %508 }
 0x6c4   :  { %v512_v28 = vmul.f32 0.015625, %v509_v27  ;;  %v515_v30 = vmul.f32 %v513_v26, %v513_v26 }
 0x6c6   :  { %v514_v32 = vsub.f32 %v503_v20, %v512_v28  ;;  %v517_v33 = vsel %vm132_vm1, %v515_v30, 0.0 }
 0x6c7   :  { %518 = vadd.xlane.f32.xlu1 %v517_v33 }
 0x6c8   :  { %v516_v34 = vmul.f32 %v514_v32, %v514_v32 }
 0x6ca   :  { %v520_v24 = vsel %vm132_vm1, %v516_v34, 0.0 }
 0x6cb   :  { %521 = vadd.xlane.f32.xlu1 %v520_v24 }
 0x754   :  { %v519_v54 = vpop.xlane.xlu1 %518 }
 0x755   :  { %v523_v55 = vmul.f32 0.015625, %v519_v54 }
 0x757   :  { %v525_v57 = vadd.f32 1e-05, %v523_v55 }
 0x758   :  { %v522_v58 = vpop.xlane.xlu1 %521 }
 0x759   :  { %2086 = vrsqrt.f32 %v525_v57  ;;  %v524_v59 = vmul.f32 0.015625, %v522_v58 }
 0x75b   :  { %v526_v60 = vadd.f32 1e-05, %v524_v59 }
 0x75d   :  { %2088 = vrsqrt.f32 %v526_v60 }
 0x763   :  { %v2087_v63 = vpop.eup %2086 }
 0x764   :  { %v529_v1 = vmul.f32 %v2087_v63, %v513_v26  ;;  %v2028_v63 = vld [vmem:[%s2620_s2 + $0x44] ss:$8 sps:$4 sm:$0xff]  }
 0x765   :  { %922 = vmatprep.subr.bf16.mxu1 %v2028_v63 }
 0x766   :  { %v531_v5 = vmul.f32 %v529_v1, %v65_v2  ;;  %v2026_v1 = vld [vmem:[%s2620_s2 + $0x40] ss:$8 sps:$4 sm:$0xff]  }
 0x767   :  { %v2089_v4 = vpop.eup %2088 }
 0x768   :  { %v530_v6 = vmul.f32 %v2089_v4, %v514_v32  ;;  %v533_v9 = vadd.f32 %v531_v5, %v66_v7  ;;  %v2029_v4 = vld [vmem:[%s2620_s2 + $0x50] ss:$8 sps:$4 sm:$0xff]   ;;  %v2034_v5 = vld [vmem:[%s2620_s2 + $0x64] ss:$8 sps:$4 sm:$0xff]  }
 0x76a   :  { %v532_v8 = vmul.f32 %v530_v6, %v65_v2  ;;  %v2031_v2 = vld [vmem:[%s2620_s2 + $0x54] ss:$8 sps:$4 sm:$0xff]   ;;  %v2032_v6 = vld [vmem:[%s2620_s2 + $0x60] ss:$8 sps:$4 sm:$0xff]  }
 0x76c   :  { %v534_v10 = vadd.f32 %v532_v8, %v66_v7  ;;  %v2035_v7 = vld [vmem:[%s2620_s2 + $0x70] ss:$8 sps:$4 sm:$0xff]   ;;  %v2037_v8 = vld [vmem:[%s2620_s2 + $0x74] ss:$8 sps:$4 sm:$0xff]  }
 0x76e   :  { %v535_v11 = vpack.c.bf16 %v534_v10, %v533_v9 }
 0x770   :  { %1697 = vmatmul.mubr.msk.bf16.vlgmr.msra.gmra.mrb[4].mxu1 %vm132_vm1, %v535_v11 }
 0x771   :  { %954 = vmatprep.mubr.bf16.mxu1 %v2118_v0  ;;  %923 = vmatpush1.bf16.msra.mxu1 %v2026_v1 }
 0x772   :  { %924 = vmatprep.subr.bf16.mxu1 %v2031_v2 }
 0x775   :  { %925 = vmatpush1.bf16.msra.mxu1 %v2029_v4 }
 0x776   :  { %926 = vmatprep.subr.bf16.mxu1 %v2034_v5 }
 0x779   :  { %927 = vmatpush1.bf16.msra.mxu1 %v2032_v6 }
 0x77a   :  { %928 = vmatprep.subr.bf16.mxu1 %v2037_v8 }
 0x77d   :  { %929 = vmatpush1.bf16.msra.mxu1 %v2035_v7 }
 0x843   :  { %v632_v20 = vpop.f32.mrb[4].mxu1 }
 0x844   :  { %v633_v21 = vadd.f32 %v632_v20, %v548_v18  ;;  %v634_v22 = vpop.f32.mrb[5].mxu1 }
 0x845   :  { %v635_v23 = vadd.f32 %v634_v22, %v552_v19  ;;  %v636_v26 = vpop.f32.mrb[6].mxu1 }
 0x846   :  { %v637_v27 = vadd.f32 %v636_v26, %v548_v18  ;;  %v638_v28 = vpop.f32.mrb[7].mxu1  ;;  %v641_v32 = vmax.f32 %v633_v21, 0.0  ;;  %v71_v21 = vld [vmem:[%s2621_s1 + $0x32] ss:$0 sm:$0xff] }
 0x847   :  { %v639_v30 = vadd.f32 %v638_v28, %v552_v19  ;;  %v642_v34 = vmax.f32 %v635_v23, 0.0  ;;  %v1714_v28 = vld [vmem:[%s2621_s1 + $0x33] ss:$8 sm:$0x3] }
 0x848   :  { %v643_v33 = vmax.f32 %v637_v27, 0.0 }
 0x849   :  { %v644_v24 = vmax.f32 %v639_v30, 0.0  ;;  %v872_v30 = vrot.slane %v1714_v28, %v2214_v29 }
 0x84a   :  { %v645_v25 = vpack.c.bf16 %v643_v33, %v641_v32  ;;  %v876_v33 = vrot.slane %v1714_v28, %v2219_v31 }
 0x84b   :  { %v646_v35 = vpack.c.bf16 %v644_v24, %v642_v34 }
 0x84d   :  { %807 = vmatprep.mubr.bf16.mxu0 %v646_v35 }
 0x84e   :  { %808 = vmatmul.mubr.bf16.vlgmr.msra.gmra.mrb[16].mxu0 %v645_v25 }
 0x921   :  { %v1846_v36 = vpop.f32.mrb[16].mxu0 }
 0x922   :  { %v1847_v38 = vpop.f32.mrb[17].mxu0 }
 0x923   :  { %v1848_v39 = vadd.f32 %v1847_v38, %v1846_v36  ;;  %v1849_v42 = vpop.f32.mrb[18].mxu0 }
 0x924   :  { %v1850_v43 = vpop.f32.mrb[19].mxu0 }
 0x925   :  { %v810_v45 = vadd.f32 %v1848_v39, %v69_v37  ;;  %v1851_v46 = vadd.f32 %v1850_v43, %v1849_v42 }
 0x927   :  { %v813_v47 = vadd.f32 %v1851_v46, %v69_v37  ;;  %v816_v48 = vadd.f32 %v810_v45, %v533_v9 }
 0x929   :  { %v818_v49 = vsel %vm132_vm1, %v816_v48, 0.0  ;;  %v817_v40 = vadd.f32 %v813_v47, %v534_v10 }
 0x92a   :  { %819 = vadd.xlane.f32.xlu1 %v818_v49 }
 0x92b   :  { %v821_v41 = vsel %vm132_vm1, %v817_v40, 0.0 }
 0x92e   :  { %822 = vadd.xlane.f32.xlu1 %v821_v41 }
 0x9b7   :  { %v820_v50 = vpop.xlane.xlu1 %819 }
 0x9b8   :  { %v824_v51 = vmul.f32 0.015625, %v820_v50 }
 0x9ba   :  { %v826_v52 = vsub.f32 %v816_v48, %v824_v51 }
 0x9bb   :  { %v823_v53 = vpop.xlane.xlu1 %822 }
 0x9bc   :  { %v825_v54 = vmul.f32 0.015625, %v823_v53  ;;  %v828_v55 = vmul.f32 %v826_v52, %v826_v52 }
 0x9be   :  { %v827_v57 = vsub.f32 %v817_v40, %v825_v54  ;;  %v830_v58 = vsel %vm132_vm1, %v828_v55, 0.0 }
 0x9bf   :  { %831 = vadd.xlane.f32.xlu0 %v830_v58 }
 0x9c0   :  { %v829_v59 = vmul.f32 %v827_v57, %v827_v57 }
 0x9c2   :  { %v833_v60 = vsel %vm132_vm1, %v829_v59, 0.0 }
 0x9c3   :  { %834 = vadd.xlane.f32.xlu1 %v833_v60 }
 0xa4c   :  { %v832_v9 = vpop.xlane.xlu0 %831 }
 0xa4d   :  { %v836_v10 = vmul.f32 0.015625, %v832_v9 }
 0xa4f   :  { %v838_v11 = vadd.f32 1e-05, %v836_v10 }
 0xa50   :  { %v835_v12 = vpop.xlane.xlu1 %834 }
 0xa51   :  { %2090 = vrsqrt.f32 %v838_v11  ;;  %v837_v13 = vmul.f32 0.015625, %v835_v12 }
 0xa53   :  { %v839_v14 = vadd.f32 1e-05, %v837_v13 }
 0xa55   :  { %2092 = vrsqrt.f32 %v839_v14 }
 0xa5b   :  { %v2091_v15 = vpop.eup %2090 }
 0xa5c   :  { %v842_v16 = vmul.f32 %v2091_v15, %v826_v52 }
 0xa5e   :  { %v844_v19 = vmul.f32 %v842_v16, %v70_v17 }
 0xa5f   :  { %v2093_v18 = vpop.eup %2092 }
 0xa60   :  { %v843_v20 = vmul.f32 %v2093_v18, %v827_v57  ;;  %v2432_v23 = vadd.f32 %v844_v19, %v71_v21 }
 0xa62   :  { %v845_v22 = vmul.f32 %v843_v20, %v70_v17 }
 0xa64   :  { %v2434_v26 = vadd.f32 %v845_v22, %v71_v21 }
 0xa66   :  { %v858_v27 = vpack.c.bf16 %v2434_v26, %v2432_v23 }
 0xa68   :  { %1732 = vmatmul.mubr.msk.bf16.vlgmr.msra.gmra.mrb[8].mxu1 %vm132_vm1, %v858_v27 }
 0xb3b   :  { %v956_v32 = vpop.f32.mrb[8].mxu1 }
 0xb3c   :  { %v958_v34 = vpop.f32.mrb[9].mxu1  ;;  %v957_v25 = vadd.f32 %v956_v32, %v872_v30 }
 0xb3d   :  { %v960_v24 = vpop.f32.mrb[10].mxu1  ;;  %v2444_v37 = vadd.f32 %v958_v34, %v876_v33 }
 0xb3e   :  { %v961_v35 = vadd.f32 %v960_v24, %v872_v30  ;;  %v962_v36 = vpop.f32.mrb[11].mxu1  ;;  %v2039_v30 = vld [vmem:[%s2623_s3 + $0x30] sm:$0xff]  }
 0xb3f   :  { %v2446_v38 = vadd.f32 %v962_v36, %v876_v33 }
 0xb40   :  { %v1972_v39 = vpack.i.bf16 %v961_v35, %v957_v25  ;;  %v981_v42 = vpack.c.bf16 %v961_v35, %v957_v25 }
 0xb41   :  { %v1977_v43 = vpack.i.bf16 %v2446_v38, %v2444_v37  ;;  %v1104_v45 = vpack.c.bf16 %v2446_v38, %v2444_v37 }
 0xb42   :  { %1973 = vrot.lane.b32.xlu1 %v1972_v39, %s2119_s30  ;;  %1924 = vmatprep.mubr.msk.bf16.mxu1 %vm203_vm2, %v981_v42 }
 0xb43   :  { %1928 = vmatprep.subr.bf16.mxu0 %v1104_v45 }
 0xb44   :  { %1929 = vmatpush3.bf16.msra.mxu0 %v1104_v45 }
 0xb46   :  { %985 = vrot.lane.b32.xlu1 %v981_v42, %s2120_s8 }
 0xbb4   :  { %v1974_v46 = vpop.permute.xlu1 %1973 }
 0xbb5   :  { %v1976_v47 = vunpack.i.h.bf16 %v1974_v46  ;;  %v1975_v48 = vunpack.i.l.bf16 %v1974_v46 }
 0xbb7   :  { %v982_v49 = vpack.c.bf16 %v1976_v47, %v1975_v48 }
 0xbb8   :  { %v986_v40 = vpop.permute.xlu1 %985 }
 0xbb9   :  { %v996_v41 = vsel %vm203_vm2, %v986_v40, 0  ;;  %987 = vrot.lane.b32.xlu1 %v982_v49, %s2120_s8  ;;  %1954 = vmatprep.subr.msk.bf16.mxu1 %vm203_vm2, %v986_v40  ;;  %v2038_v40 = vld [vmem:[%s2623_s3 + $0x20] sm:$0xff]  }
 0xbba   :  { %1921 = vmatpush3.bf16.xpose.msra.mxu1 %v996_v41 }
 0xc2b   :  { %v988_v50 = vpop.permute.xlu1 %987 }
 0xc2c   :  { %v999_v51 = vsel %vm203_vm2, %v988_v50, 0  ;;  %1955 = vmatprep.subr.msk.bf16.mxu1 %vm203_vm2, %v988_v50  ;;  %v2041_v50 = vld [vmem:[%s2623_s3 + $0x38] sm:$0xff]  }
 0xc2d   :  { %1923 = vmatpush3.bf16.xpose.msra.mxu1 %v999_v51  ;;  %v2040_v51 = vld [vmem:[%s2623_s3 + $0x28] sm:$0xff]  }
 0xc2e   :  { %1944 = vmatprep.subr.bf16.mxu1 %v2121_v44 }
 0xc34   :  { %1925 = vmatmul.mubr.msk.bf16.vlgmr.msra.gmra.mrb[12].mxu1 %vm203_vm2, %v982_v49 }
 0xc35   :  { %1948 = vmatprep.mubr.msk.bf16.mxu1 %vm2122_vm3, %v2121_v44  ;;  %1945 = vmatpush3.bf16.msra.mxu1 %v2039_v30  ;;  %v2053_v30 = vld [vmem:[%s2624_s4 + $0x74] ss:$8 sps:$4 sm:$0xff]  }
 0xc36   :  { %1946 = vmatprep.subr.bf16.mxu1 %v2121_v44 }
 0xc39   :  { %1947 = vmatpush3.bf16.msra.mxu1 %v2041_v50  ;;  %v851_v50 = vld [vmem:[%s2621_s1 + $0x35] ss:$0 sm:$0xff] }
 0xd07   :  { %v1926_v52 = vpop.f32.mrb[12].mxu1 }
 0xd08   :  { %v1035_v53 = vpop.f32.mrb[13].mxu1  ;;  %v1052_v54 = vmul.f32 0.17677669, %v1926_v52 }
 0xd09   :  { %v1050_v55 = vmul.f32 0.17677669, %v1035_v53  ;;  %v1927_v57 = vpop.f32.mrb[14].mxu1 }
 0xd0a   :  { %v1038_v58 = vpop.f32.mrb[15].mxu1  ;;  %v1053_v63 = vmul.f32 0.17677669, %v1927_v57  ;;  %v1056_v4 = vadd.f32 %v1052_v54, %v2260_v3 }
 0xd0b   :  { %v1051_v59 = vmul.f32 0.17677669, %v1038_v58  ;;  %v1054_v60 = vadd.f32 %v1050_v55, %v2244_v56 }
 0xd0c   :  { %v1064_v6 = vsel %vm203_vm2, %v1056_v4, -inf  ;;  %v1057_v7 = vadd.f32 %v1053_v63, %v2254_v62 }
 0xd0d   :  { %v1058_v1 = vsel %vm203_vm2, %v1054_v60, -inf  ;;  %v1055_v2 = vadd.f32 %v1051_v59, %v2249_v61 }
 0xd0e   :  { %1059 = vmax.xlane.f32.xlu0 %v1058_v1  ;;  %v1067_v8 = vsel %vm203_vm2, %v1057_v7, -inf }
 0xd0f   :  { %v1061_v5 = vsel %vm203_vm2, %v1055_v2, -inf }
 0xd10   :  { %1062 = vmax.xlane.f32.xlu1 %v1061_v5 }
 0xd12   :  { %1065 = vmax.xlane.f32.xlu0 %v1064_v6 }
 0xd16   :  { %1068 = vmax.xlane.f32.xlu0 %v1067_v8 }
 0xd9b   :  { %v1060_v56 = vpop.xlane.xlu0 %1059 }
 0xd9c   :  { %v1070_v9 = vsub.f32 %v1054_v60, %v1060_v56 }
 0xd9d   :  { %v1063_v13 = vpop.xlane.xlu1 %1062 }
 0xd9e   :  { %v1074_v12 = vmul.f32 1.442695, %v1070_v9  ;;  %v1071_v15 = vsub.f32 %v1055_v2, %v1063_v13 }
 0xd9f   :  { %v1066_v10 = vpop.xlane.xlu0 %1065 }
 0xda0   :  { %v1072_v11 = vsub.f32 %v1056_v4, %v1066_v10  ;;  %v1076_v17 = vmul.f32 1.442695, %v1071_v15 }
 0xda2   :  { %v1078_v61 = vmul.f32 1.442695, %v1072_v11 }
 0xda3   :  { %v1069_v3 = vpop.xlane.xlu0 %1068 }
 0xda4   :  { %2094 = vpow2.f32 %v1078_v61  ;;  %v1073_v14 = vsub.f32 %v1057_v7, %v1069_v3 }
 0xda5   :  { %2096 = vpow2.f32 %v1074_v12 }
 0xda6   :  { %v1080_v16 = vmul.f32 1.442695, %v1073_v14 }
 0xda8   :  { %2098 = vpow2.f32 %v1080_v16 }
 0xda9   :  { %2100 = vpow2.f32 %v1076_v17 }
 0xdae   :  { %v2095_v62 = vpop.eup %2094 }
 0xdaf   :  { %v1088_v18 = vsel %vm203_vm2, %v2095_v62, 0.0  ;;  %v2097_v19 = vpop.eup %2096 }
 0xdb0   :  { %1089 = vadd.xlane.f32.xlu0 %v1088_v18  ;;  %v1082_v20 = vsel %vm203_vm2, %v2097_v19, 0.0 }
 0xdb2   :  { %v2099_v21 = vpop.eup %2098 }
 0xdb3   :  { %v1091_v22 = vsel %vm203_vm2, %v2099_v21, 0.0  ;;  %v2101_v27 = vpop.eup %2100 }
 0xdb4   :  { %1083 = vadd.xlane.f32.xlu0 %v1082_v20  ;;  %v1085_v28 = vsel %vm203_vm2, %v2101_v27, 0.0  ;;  %v2047_v20 = vld [vmem:[%s2624_s4 + $0x54] ss:$8 sps:$4 sm:$0xff]  }
 0xdb8   :  { %1092 = vadd.xlane.f32.xlu0 %v1091_v22  ;;  %v2050_v22 = vld [vmem:[%s2624_s4 + $0x64] ss:$8 sps:$4 sm:$0xff]  }
 0xdbc   :  { %1086 = vadd.xlane.f32.xlu0 %v1085_v28  ;;  %v2051_v28 = vld [vmem:[%s2624_s4 + $0x70] ss:$8 sps:$4 sm:$0xff]  }
 0xdd2   :  { %1978 = vrot.lane.b32.xlu0 %v1977_v43, %s2119_s30 }
 0xe3d   :  { %v1090_v32 = vpop.xlane.xlu0 %1089 }
 0xe41   :  { %v1084_v33 = vpop.xlane.xlu0 %1083 }
 0xe45   :  { %v1093_v34 = vpop.xlane.xlu0 %1092 }
 0xe46   :  { %2102 = vrcp.f32 %v1093_v34  ;;  %v2056_v34 = vld [vmem:[%s2625_s5 + $0xc8] sm:$0xff]  }
 0xe47   :  { %2104 = vrcp.f32 %v1084_v33  ;;  %v2055_v33 = vld [vmem:[%s2625_s5 + $0x80] sm:$0xff]  }
 0xe48   :  { %2106 = vrcp.f32 %v1090_v32  ;;  %v2054_v32 = vld [vmem:[%s2625_s5 + $0xc0] sm:$0xff]  }
 0xe49   :  { %v1087_v24 = vpop.xlane.xlu0 %1086  ;;  %1866 = vmatprep.subr.bf16.mxu1 %v2054_v32 }
 0xe4a   :  { %2108 = vrcp.f32 %v1087_v24  ;;  %v2057_v24 = vld [vmem:[%s2625_s5 + $0x88] sm:$0xff]  }
 0xe4d   :  { %v1979_v25 = vpop.permute.xlu0 %1978 }
 0xe4e   :  { %v1981_v35 = vunpack.i.h.bf16 %v1979_v25  ;;  %v1980_v36 = vunpack.i.l.bf16 %v1979_v25  ;;  %v2058_v25 = vld [vmem:[%s2625_s5 + $0xd0] sm:$0xff]  }
 0xe50   :  { %v1105_v37 = vpack.c.bf16 %v1981_v35, %v1980_v36  ;;  %v2103_v38 = vpop.eup %2102  ;;  %v2059_v35 = vld [vmem:[%s2625_s5 + $0x90] sm:$0xff]   ;;  %v2060_v36 = vld [vmem:[%s2625_s5 + $0xd8] sm:$0xff]  }
 0xe51   :  { %v2105_v39 = vpop.eup %2104  ;;  %v1101_v45 = vmul.f32 %v2103_v38, %v2099_v21  ;;  %v2045_v21 = vld [vmem:[%s2624_s4 + $0x50] ss:$8 sps:$4 sm:$0xff]   ;;  %v2062_v38 = vld [vmem:[%s2625_s5 + $0xe0] sm:$0xff]  }
 0xe52   :  { %1930 = vmatprep.subr.bf16.mxu0 %v1105_v37  ;;  %v2107_v42 = vpop.eup %2106  ;;  %v1098_v46 = vmul.f32 %v2105_v39, %v2097_v19  ;;  %v2042_v19 = vld [vmem:[%s2624_s4 + $0x40] ss:$8 sps:$4 sm:$0xff]  }
 0xe53   :  { %1931 = vmatpush3.bf16.msra.mxu0 %v1105_v37  ;;  %v1100_v48 = vmul.f32 %v2107_v42, %v2095_v62  ;;  %v2061_v37 = vld [vmem:[%s2625_s5 + $0x98] sm:$0xff]   ;;  %v2063_v39 = vld [vmem:[%s2625_s5 + $0xa0] sm:$0xff]   ;;  %v2064_v42 = vld [vmem:[%s2625_s5 + $0xe8] sm:$0xff]  }
 0xe54   :  { %v2109_v43 = vpop.eup %2108  ;;  %1936 = vmatprep.subr.bf16.mxu0 %v2121_v44 }
 0xe55   :  { %v1099_v47 = vmul.f32 %v2109_v43, %v2101_v27  ;;  %v1103_v41 = vpack.c.bf16 %v1101_v45, %v1100_v48  ;;  %v2048_v27 = vld [vmem:[%s2624_s4 + $0x60] ss:$8 sps:$4 sm:$0xff]  }
 0xe57   :  { %v1102_v49 = vpack.c.bf16 %v1099_v47, %v1098_v46 }
 0xe59   :  { %1932 = vmatprep.mubr.msk.bf16.mxu0 %vm203_vm2, %v1102_v49 }
 0xe5a   :  { %1933 = vmatmul.mubr.msk.bf16.vlgmr.msra.gmra.mrb[20].mxu0 %vm203_vm2, %v1103_v41 }
 0xe5b   :  { %1937 = vmatpush3.bf16.msra.mxu0 %v2038_v40  ;;  %1940 = vmatprep.mubr.msk.bf16.mxu0 %vm2122_vm3, %v2121_v44 }
 0xe5c   :  { %1938 = vmatprep.subr.bf16.mxu0 %v2121_v44  ;;  %v850_v44 = vld [vmem:[%s2621_s1 + $0x34] ss:$0 sm:$0xff] }
 0xe5f   :  { %1939 = vmatpush3.bf16.msra.mxu0 %v2040_v51 }
 0xf2d   :  { %v1934_v52 = vpop.f32.mrb[20].mxu0 }
 0xf2e   :  { %v1146_v53 = vpop.f32.mrb[21].mxu0 }
 0xf2f   :  { %v1935_v54 = vpop.f32.mrb[22].mxu0 }
 0xf30   :  { %v1229_v55 = vpack.c.bf16 %v1935_v54, %v1934_v52  ;;  %v1149_v57 = vpop.f32.mrb[23].mxu0  ;;  %v852_v54 = vld [vmem:[%s2621_s1 + $0x36] ss:$0 sm:$0xff] }
 0xf31   :  { %v1170_v58 = vpack.c.bf16 %v1149_v57, %v1146_v53 }
 0xf32   :  { %1949 = vmatmul.mubr.msk.bf16.vlgmr.msra.gmra.mrb[16].mxu1 %vm203_vm2, %v1229_v55 }
 0xf33   :  { %1941 = vmatmul.mubr.msk.bf16.vlgmr.msra.gmra.mrb[24].mxu0 %vm203_vm2, %v1170_v58  ;;  %1867 = vmatpush3.bf16.msra.mxu1 %v2055_v33 }
 0xf34   :  { %1416 = vmatprep.mubr.bf16.mxu0 %v2118_v0  ;;  %1868 = vmatprep.subr.bf16.mxu1 %v2056_v34 }
 0xf37   :  { %1869 = vmatpush3.bf16.msra.mxu1 %v2057_v24 }
 0xf38   :  { %1870 = vmatprep.subr.bf16.mxu1 %v2058_v25 }
 0xf3b   :  { %1871 = vmatpush3.bf16.msra.mxu1 %v2059_v35 }
 0xf3c   :  { %1872 = vmatprep.subr.bf16.mxu1 %v2060_v36 }
 0xf3f   :  { %1873 = vmatpush3.bf16.msra.mxu1 %v2061_v37 }
 0xf40   :  { %1874 = vmatprep.subr.bf16.mxu1 %v2062_v38 }
 0xf43   :  { %1875 = vmatpush3.bf16.msra.mxu1 %v2063_v39 }
 0xf44   :  { %1876 = vmatprep.subr.bf16.mxu1 %v2064_v42 }
0x1005   :  { %v1279_v59 = vpop.f32.mrb[16].mxu1 }
0x1006   :  { %v1220_v60 = vpop.f32.mrb[24].mxu0  ;;  %v1950_v63 = vpop.f32.mrb[17].mxu1 }
0x1007   :  { %v1227_v1 = vadd.f32 %v1220_v60, %v850_v44  ;;  %v1942_v2 = vpop.f32.mrb[25].mxu0  ;;  %v1282_v4 = vpop.f32.mrb[18].mxu1  ;;  %v2066_v60 = vld [vmem:[%s2625_s5 + $0xf0] sm:$0xff]  }
0x1008   :  { %v1223_v5 = vpop.f32.mrb[26].mxu0  ;;  %v1951_v6 = vpop.f32.mrb[19].mxu1  ;;  %v2067_v63 = vld [vmem:[%s2625_s5 + $0xb0] sm:$0xff]   ;;  %v2069_v2 = vld [vmem:[%s2625_s5 + $0xb8] sm:$0xff]  }
0x1009   :  { %v1286_v7 = vadd.f32 %v1279_v59, %v1227_v1  ;;  %v1228_v8 = vadd.f32 %v1223_v5, %v850_v44  ;;  %v1943_v56 = vpop.f32.mrb[27].mxu0  ;;  %v2065_v59 = vld [vmem:[%s2625_s5 + $0xa8] sm:$0xff]   ;;  %v2068_v1 = vld [vmem:[%s2625_s5 + $0xf8] sm:$0xff]  }
0x100a   :  { %1877 = vmatpush3.bf16.msra.mxu1 %v2065_v59 }
0x100b   :  { %v1287_v9 = vadd.f32 %v1282_v4, %v1228_v8  ;;  %v1288_v10 = vadd.f32 %v1286_v7, %v2432_v23  ;;  %1878 = vmatprep.subr.bf16.mxu1 %v2066_v60  ;;  %v1715_v4 = vld [vmem:[%s2621_s1 + $0x37] ss:$8 sm:$0x3] }
0x100c   :  { %v1334_v5 = vrot.slane %v1715_v4, %v2214_v29  ;;  %v1338_v6 = vrot.slane %v1715_v4, %v2219_v31  ;;  %v855_v29 = vld [vmem:[%s2621_s1 + $0x40] ss:$0 sm:$0xff] }
0x100d   :  { %v1290_v0 = vsel %vm132_vm1, %v1288_v10, 0.0  ;;  %v1289_v11 = vadd.f32 %v1287_v9, %v2434_v26  ;;  %v2044_v26 = vld [vmem:[%s2624_s4 + $0x44] ss:$8 sps:$4 sm:$0xff]  }
0x100e   :  { %1291 = vadd.xlane.f32.xlu1 %v1290_v0  ;;  %1384 = vmatprep.subr.bf16.mxu0 %v2044_v26 }
0x100f   :  { %v1293_v12 = vsel %vm132_vm1, %v1289_v11, 0.0  ;;  %1385 = vmatpush1.bf16.msra.mxu0 %v2042_v19  ;;  %1879 = vmatpush3.bf16.msra.mxu1 %v2067_v63 }
0x1010   :  { %1386 = vmatprep.subr.bf16.mxu0 %v2047_v20  ;;  %1880 = vmatprep.subr.bf16.mxu1 %v2068_v1 }
0x1012   :  { %1294 = vadd.xlane.f32.xlu1 %v1293_v12 }
0x1013   :  { %1387 = vmatpush1.bf16.msra.mxu0 %v2045_v21  ;;  %1881 = vmatpush3.bf16.msra.mxu1 %v2069_v2 }
0x1014   :  { %1388 = vmatprep.subr.bf16.mxu0 %v2050_v22 }
0x1017   :  { %1389 = vmatpush1.bf16.msra.mxu0 %v2048_v27 }
0x1018   :  { %1390 = vmatprep.subr.bf16.mxu0 %v2053_v30 }
0x101b   :  { %1391 = vmatpush1.bf16.msra.mxu0 %v2051_v28 }
0x109b   :  { %v1292_v61 = vpop.xlane.xlu1 %1291 }
0x109c   :  { %v1296_v13 = vmul.f32 0.015625, %v1292_v61 }
0x109e   :  { %v1298_v3 = vsub.f32 %v1288_v10, %v1296_v13 }
0x109f   :  { %v1295_v14 = vpop.xlane.xlu1 %1294 }
0x10a0   :  { %v1297_v15 = vmul.f32 0.015625, %v1295_v14  ;;  %v1300_v16 = vmul.f32 %v1298_v3, %v1298_v3 }
0x10a2   :  { %v1299_v17 = vsub.f32 %v1289_v11, %v1297_v15  ;;  %v1302_v62 = vsel %vm132_vm1, %v1300_v16, 0.0 }
0x10a3   :  { %1303 = vadd.xlane.f32.xlu1 %v1302_v62 }
0x10a4   :  { %v1301_v18 = vmul.f32 %v1299_v17, %v1299_v17 }
0x10a6   :  { %v1305_v23 = vsel %vm132_vm1, %v1301_v18, 0.0 }
0x10a7   :  { %1306 = vadd.xlane.f32.xlu1 %v1305_v23 }
0x1130   :  { %v1304_v43 = vpop.xlane.xlu1 %1303 }
0x1131   :  { %v1308_v45 = vmul.f32 0.015625, %v1304_v43 }
0x1133   :  { %v1310_v46 = vadd.f32 1e-05, %v1308_v45 }
0x1134   :  { %v1307_v47 = vpop.xlane.xlu1 %1306 }
0x1135   :  { %2110 = vrsqrt.f32 %v1310_v46  ;;  %v1309_v48 = vmul.f32 0.015625, %v1307_v47 }
0x1137   :  { %v1311_v49 = vadd.f32 1e-05, %v1309_v48 }
0x1139   :  { %2112 = vrsqrt.f32 %v1311_v49  ;;  %v856_v49 = vld [vmem:[%s2621_s1 + $0x41] ss:$0 sm:$0xff] }
0x113f   :  { %v2111_v40 = vpop.eup %2110 }
0x1140   :  { %v1314_v41 = vmul.f32 %v2111_v40, %v1298_v3 }
0x1142   :  { %v1316_v52 = vmul.f32 %v1314_v41, %v851_v50  ;;  %v857_v41 = vld [vmem:[%s2621_s1 + $0x42] ss:$0 sm:$0xff] }
0x1143   :  { %v2113_v51 = vpop.eup %2112 }
0x1144   :  { %v1315_v53 = vmul.f32 %v2113_v51, %v1299_v17  ;;  %v1318_v57 = vadd.f32 %v1316_v52, %v852_v54 }
0x1146   :  { %v1317_v55 = vmul.f32 %v1315_v53, %v851_v50 }
0x1148   :  { %v1319_v58 = vadd.f32 %v1317_v55, %v852_v54 }
0x114a   :  { %v1320_v44 = vpack.c.bf16 %v1319_v58, %v1318_v57 }
0x114c   :  { %1767 = vmatmul.mubr.msk.bf16.vlgmr.msra.gmra.mrb[28].mxu0 %vm132_vm1, %v1320_v44 }
0x121f   :  { %v1418_v7 = vpop.f32.mrb[28].mxu0 }
0x1220   :  { %v1419_v8 = vadd.f32 %v1418_v7, %v1334_v5  ;;  %v1420_v56 = vpop.f32.mrb[29].mxu0 }
0x1221   :  { %v1421_v9 = vadd.f32 %v1420_v56, %v1338_v6  ;;  %v1422_v10 = vpop.f32.mrb[30].mxu0 }
0x1222   :  { %v1423_v0 = vadd.f32 %v1422_v10, %v1334_v5  ;;  %v1424_v11 = vpop.f32.mrb[31].mxu0  ;;  %v1427_v61 = vmax.f32 %v1419_v8, 0.0 }
0x1223   :  { %v1425_v12 = vadd.f32 %v1424_v11, %v1338_v6  ;;  %v1428_v3 = vmax.f32 %v1421_v9, 0.0 }
0x1224   :  { %v1429_v13 = vmax.f32 %v1423_v0, 0.0  ;;  %v1654_v0 = vld [vmem:[%s2621_s1 + $0x1] ss:$0 sm:$0xff] }
0x1225   :  { %v1430_v14 = vmax.f32 %v1425_v12, 0.0 }
0x1226   :  { %v1431_v15 = vpack.c.bf16 %v1429_v13, %v1427_v61  ;;  %v1655_v13 = vld [vmem:[%s2621_s1 + $0x2] ss:$0 sm:$0xff] }
0x1227   :  { %v1432_v16 = vpack.c.bf16 %v1430_v14, %v1428_v3 }
0x1229   :  { %1594 = vmatprep.mubr.bf16.mxu1 %v1432_v16 }
0x122a   :  { %1595 = vmatmul.mubr.bf16.vlgmr.msra.gmra.mrb[20].mxu1 %v1431_v15 }
0x12fd   :  { %v1882_v17 = vpop.f32.mrb[20].mxu1 }
0x12fe   :  { %v1883_v31 = vpop.f32.mrb[21].mxu1 }
0x12ff   :  { %v1884_v62 = vadd.f32 %v1883_v31, %v1882_v17  ;;  %v1885_v18 = vpop.f32.mrb[22].mxu1 }
0x1300   :  { %v1886_v23 = vpop.f32.mrb[23].mxu1 }
0x1301   :  { %v1597_v26 = vadd.f32 %v1884_v62, %v855_v29  ;;  %v1887_v19 = vadd.f32 %v1886_v23, %v1885_v18 }
0x1303   :  { %v1600_v20 = vadd.f32 %v1887_v19, %v855_v29  ;;  %v1603_v21 = vadd.f32 %v1597_v26, %v1318_v57 }
0x1305   :  { %v1605_v22 = vsel %vm132_vm1, %v1603_v21, 0.0  ;;  %v1604_v27 = vadd.f32 %v1600_v20, %v1319_v58 }
0x1306   :  { %1606 = vadd.xlane.f32.xlu0 %v1605_v22 }
0x1307   :  { %v1608_v28 = vsel %vm132_vm1, %v1604_v27, 0.0 }
0x1308   :  { %1609 = vadd.xlane.f32.xlu1 %v1608_v28 }
0x1393   :  { %v1607_v30 = vpop.xlane.xlu0 %1606 }
0x1394   :  { %v1611_v32 = vmul.f32 0.015625, %v1607_v30 }
0x1395   :  { %v1610_v33 = vpop.xlane.xlu1 %1609 }
0x1396   :  { %v1613_v34 = vsub.f32 %v1603_v21, %v1611_v32  ;;  %v1612_v24 = vmul.f32 0.015625, %v1610_v33 }
0x1398   :  { %v1614_v25 = vsub.f32 %v1604_v27, %v1612_v24  ;;  %v1615_v35 = vmul.f32 %v1613_v34, %v1613_v34 }
0x139a   :  { %v1617_v36 = vsel %vm132_vm1, %v1615_v35, 0.0  ;;  %v1616_v37 = vmul.f32 %v1614_v25, %v1614_v25 }
0x139b   :  { %1618 = vadd.xlane.f32.xlu1 %v1617_v36 }
0x139c   :  { %v1620_v38 = vsel %vm132_vm1, %v1616_v37, 0.0 }
0x139f   :  { %1621 = vadd.xlane.f32.xlu1 %v1620_v38 }
0x1428   :  { %v1619_v39 = vpop.xlane.xlu1 %1618 }
0x1429   :  { %v1623_v42 = vmul.f32 0.015625, %v1619_v39 }
0x142b   :  { %v1625_v43 = vadd.f32 1e-05, %v1623_v42 }
0x142c   :  { %v1622_v45 = vpop.xlane.xlu1 %1621 }
0x142d   :  { %2114 = vrsqrt.f32 %v1625_v43  ;;  %v1624_v46 = vmul.f32 0.015625, %v1622_v45 }
0x142f   :  { %v1626_v47 = vadd.f32 1e-05, %v1624_v46 }
0x1431   :  { %2116 = vrsqrt.f32 %v1626_v47 }
0x1437   :  { %v2115_v48 = vpop.eup %2114 }
0x1438   :  { %v1629_v40 = vmul.f32 %v2115_v48, %v1613_v34 }
0x143a   :  { %v1631_v50 = vmul.f32 %v1629_v40, %v856_v49 }
0x143b   :  { %v2117_v51 = vpop.eup %2116 }
0x143c   :  { %v1630_v52 = vmul.f32 %v2117_v51, %v1614_v25  ;;  %v1633_v53 = vadd.f32 %v1631_v50, %v857_v41 }
0x143e   :  { %v1632_v54 = vmul.f32 %v1630_v52, %v856_v49  ;;  %v1635_v55 = vsel %vm132_vm1, %v1633_v53, 0.0 }
0x143f   :  { %v1636_v57 = vrot.slane %v1635_v55, 4 }
0x1440   :  { %v1634_v58 = vadd.f32 %v1632_v54, %v857_v41 }
0x1441   :  { %v1637_v44 = vadd.f32 %v1636_v57, %v1635_v55 }
0x1442   :  { %v1644_v59 = vsel %vm132_vm1, %v1634_v58, 0.0 }
0x1443   :  { %v1638_v60 = vrot.slane %v1637_v44, 2  ;;  %v1645_v63 = vrot.slane %v1644_v59, 4 }
0x1445   :  { %v1639_v1 = vadd.f32 %v1638_v60, %v1637_v44  ;;  %v1646_v2 = vadd.f32 %v1645_v63, %v1644_v59 }
0x1447   :  { %v1640_v4 = vrot.slane %v1639_v1, 1  ;;  %v1647_v5 = vrot.slane %v1646_v2, 2 }
0x1449   :  { %v1648_v6 = vadd.f32 %v1647_v5, %v1646_v2  ;;  %v1641_v7 = vadd.f32 %v1640_v4, %v1639_v1 }
0x144b   :  { %v1649_v8 = vrot.slane %v1648_v6, 1  ;;  %v1643_v9 = vmul.f32 0.125, %v1641_v7 }
0x144d   :  { %v1650_v56 = vadd.f32 %v1649_v8, %v1648_v6 }
0x144f   :  { %v1651_v10 = vmul.f32 0.125, %v1650_v56 }
0x1451   :  { %v1653_v11 = vsel %vm1652_vm4, %v1643_v9, %v1651_v10 }
0x1452   :  { %v1656_v12 = vmul.f32 %v1654_v0, %v1653_v11 }
0x1454   :  { %v1658_v61 = vsel %vm1657_vm5, %v1656_v12, 0.0 }
0x1455   :  { %1659 = vadd.xlane.f32.xlu1 %v1658_v61 }
0x14e2   :  { %v1660_v3 = vpop.xlane.xlu1 %1659 }
0x14e3   :  { %v1661_v14 = vadd.f32 %v1660_v3, %v1655_v13 }
0x14e5   :  { %1663 = vst.msk [vmem:[%s2626_s7] sm:$0x3] %vm1662_vm6, %v1661_v14 }

</bundles_post_ra>
